<compile_context>
chip_gen: v6e
topology: v6e:2x2x1
jax: 0.10.0
libtpu: 0.0.40
codegen_flags: <defaults>
</compile_context>

<pallas_src>
import functools

import jax
import jax.numpy as jnp
from jax.experimental import pallas as pl
from jax.experimental.pallas import tpu as pltpu

LANE = 128


# ----------------------------- activations ----------------------------------
def _make_activation(name: str):
    if name == "relu":
        return lambda x: jnp.maximum(x, 0.0)
    elif name == "relu3":
        return lambda x: jnp.maximum(x ** 3, 0.0)
    elif name == "elu":
        return lambda x: jnp.where(x > 0, x, jnp.expm1(jnp.minimum(x, 0.0)))
    elif name == "tanh":
        return jnp.tanh
    elif name == "swish":
        return lambda x: x * jax.nn.sigmoid(x)
    else:
        raise Exception(f"Can't recognize activation {name}!")


def _round_up(n, m):
    return ((n + m - 1) // m) * m


def _vmem_capacity_bytes():
    try:
        return int(pltpu.get_tpu_info().vmem_capacity_bytes)
    except Exception:
        return 64 << 20          # conservative fallback (v7x per-TC VMEM)


# ------------------------------ kernels --------------------------------------
def _resident_kernel(x_ref, wp_ref, bp_ref, wt_ref, bt_ref, wf_ref, bf_ref,
                     o_ref, *, depth, block_per_group, activation, matmul_dtype):
    """All weights VMEM-resident; full network for one batch tile per step."""
    act = _make_activation(activation)

    # preprocess: h = x @ Wp + bp (no activation). x is already bf16.
    h = (jnp.dot(x_ref[...], wp_ref[...], preferred_element_type=jnp.float32)
         + bp_ref[...])

    # depth residual groups, statically unrolled (depth * block_per_group small)
    for d in range(depth):
        z = h
        t = z
        for j in range(block_per_group):
            l = d * block_per_group + j
            t = (jnp.dot(act(t).astype(matmul_dtype), wt_ref[l],
                         preferred_element_type=jnp.float32)
                 + bt_ref[l])
        h = t + z

    # fc: out = h @ Wf + bf (no activation)
    o_ref[...] = (jnp.dot(h.astype(matmul_dtype), wf_ref[...],
                          preferred_element_type=jnp.float32)
                  + bf_ref[...]).astype(o_ref.dtype)


def _stream_kernel(x_ref, wp_ref, bp_ref, wt_ref, bt_ref, wf_ref, bf_ref,
                   o_ref, h_ref, *, block_per_group, activation, matmul_dtype):
    """Depth as an inner 'arbitrary' grid axis; h carried in VMEM scratch."""
    act = _make_activation(activation)
    d = pl.program_id(1)          # residual-group index (carried axis)

    # preprocess only on the first group step
    @pl.when(d == 0)
    def _preprocess():
        h_ref[...] = (
            jnp.dot(x_ref[...], wp_ref[...], preferred_element_type=jnp.float32)
            + bp_ref[...])

    # residual group d: t_{j+1} = Linear_j(act(t_j)); h <- t_last + z
    z = h_ref[...]
    t = z
    for j in range(block_per_group):     # small -> static unroll
        t = (jnp.dot(act(t).astype(matmul_dtype), wt_ref[j],
                     preferred_element_type=jnp.float32)
             + bt_ref[j])
    h_ref[...] = t + z

    # fc only on the last group step
    @pl.when(d == pl.num_programs(1) - 1)
    def _fc():
        o_ref[...] = (
            jnp.dot(h_ref[...].astype(matmul_dtype), wf_ref[...],
                    preferred_element_type=jnp.float32)
            + bf_ref[...]).astype(o_ref.dtype)


# ------------------------------- wrapper --------------------------------------
def resnet_forward(x, params, *, depth, block_per_group, activation="relu",
                   tile_b=None, matmul_dtype=jnp.bfloat16):
    """x: [B, input_dim] f32.  params: pre-transposed [in, out] weights."""
    assert depth >= 1 and block_per_group >= 1
    B, D_in = x.shape
    H = params["wp"].shape[1]
    O = params["wf"].shape[1]
    assert params["wt"].shape[0] == depth * block_per_group

    # Lane-dense padding of every feature dim (exact: act(0) == 0).
    Dp = _round_up(D_in, LANE)
    Hp = _round_up(H, LANE)
    Op = _round_up(O, LANE)

    f32 = jnp.float32
    wbytes = jnp.dtype(matmul_dtype).itemsize
    n_lin = depth * block_per_group
    vmem_cap = _vmem_capacity_bytes()

    # Residency decision: all (double-buffered-by-default) weights resident iff
    # they fit roughly half of VMEM; otherwise stream one group per grid step.
    all_w_bytes = (Dp * Hp + n_lin * Hp * Hp + Hp * Op) * wbytes
    all_b_bytes = (Hp + n_lin * Hp + Op) * 4
    use_resident = 2 * (all_w_bytes + all_b_bytes) <= int(0.55 * vmem_cap)

    # Batch tile: at least 128 rows (MXU-aligned M); 256 when weights are
    # resident; larger when streaming so the weight-stream loop clears the
    # per-generation roofline ridge (512 on 128-MiB-VMEM parts, 384 on 64 MiB).
    if tile_b is None:
        if B <= 256:
            tile_b = _round_up(B, LANE)
        elif use_resident:
            tile_b = 256
        else:
            tile_b = 512 if vmem_cap >= (96 << 20) else 384
    tile_b = max(LANE, _round_up(tile_b, LANE))
    Bp = _round_up(B, tile_b)
    n_btiles = Bp // tile_b

    # Pad + cast. x and weights go to bf16 in the wrapper (halves DMA / VMEM);
    # biases stay f32. Padding is exact (act(0) == 0, padded weight rows/cols
    # are zero); padded batch rows are wasted work sliced off afterwards.
    x_p = jnp.pad(x.astype(f32), ((0, Bp - B), (0, Dp - D_in))).astype(matmul_dtype)
    wp = jnp.pad(params["wp"], ((0, Dp - D_in), (0, Hp - H))).astype(matmul_dtype)
    bp = jnp.pad(params["bp"], ((0, 0), (0, Hp - H))).astype(f32)
    wt = jnp.pad(params["wt"], ((0, 0), (0, Hp - H), (0, Hp - H))).astype(matmul_dtype)
    bt = jnp.pad(params["bt"], ((0, 0), (0, 0), (0, Hp - H))).astype(f32)
    wf = jnp.pad(params["wf"], ((0, Hp - H), (0, Op - O))).astype(matmul_dtype)
    bf = jnp.pad(params["bf"], ((0, 0), (0, Op - O))).astype(f32)

    xo_bytes = 2 * tile_b * Dp * wbytes + 2 * tile_b * Op * 4
    flops = 2 * Bp * (Dp * Hp + n_lin * Hp * Hp + Hp * Op)
    transcendentals = (0 if activation in ("relu", "relu3") else Bp * Hp * n_lin)

    if use_resident:
        # grid = (batch tiles,): weights grid-invariant -> fetched from HBM once.
        kernel = functools.partial(
            _resident_kernel, depth=depth, block_per_group=block_per_group,
            activation=activation, matmul_dtype=matmul_dtype)

        resident_bytes = xo_bytes + 2 * (all_w_bytes + all_b_bytes)
        vmem_limit = int(min(vmem_cap - (8 << 20),
                             max(resident_bytes + (8 << 20), 32 << 20)))
        bytes_accessed = int(Bp * Dp * wbytes + Bp * Op * 4
                             + all_w_bytes + all_b_bytes)

        grid_spec = pltpu.PrefetchScalarGridSpec(
            num_scalar_prefetch=0,
            grid=(n_btiles,),
            in_specs=[
                pl.BlockSpec((tile_b, Dp), lambda i: (i, 0)),          # x tile
                pl.BlockSpec((Dp, Hp), lambda i: (0, 0)),              # wp
                pl.BlockSpec((1, Hp), lambda i: (0, 0)),               # bp
                pl.BlockSpec((n_lin, Hp, Hp), lambda i: (0, 0, 0)),    # all wt
                pl.BlockSpec((n_lin, 1, Hp), lambda i: (0, 0, 0)),     # all bt
                pl.BlockSpec((Hp, Op), lambda i: (0, 0)),              # wf
                pl.BlockSpec((1, Op), lambda i: (0, 0)),               # bf
            ],
            out_specs=pl.BlockSpec((tile_b, Op), lambda i: (i, 0)),
        )
        dim_sem = ("parallel",)
    else:
        # Streaming fallback: depth axis carried, one group's weights resident
        # (double-buffered), grid-invariant blocks single-buffered.
        # NOTE: for extremely large hidden dims (2*block_per_group*Hp^2*wbytes
        # near VMEM) an additional Hp-column tiling of the group matmuls would
        # be required; not implemented here.
        kernel = functools.partial(
            _stream_kernel, block_per_group=block_per_group,
            activation=activation, matmul_dtype=matmul_dtype)

        group_w_bytes = 2 * block_per_group * Hp * Hp * wbytes
        resident_bytes = (xo_bytes + group_w_bytes
                          + (Dp * Hp + Hp * Op) * wbytes
                          + (Hp + Op) * 4 + 2 * block_per_group * Hp * 4
                          + tile_b * Hp * 4)
        vmem_limit = int(min(vmem_cap - (8 << 20),
                             max(resident_bytes + (8 << 20), 32 << 20)))
        # wt/bt are re-streamed once per batch tile; wp/wf/biases once total.
        bytes_accessed = int(
            Bp * Dp * wbytes + Bp * Op * 4
            + n_btiles * (n_lin * Hp * Hp * wbytes + n_lin * Hp * 4)
            + (Dp * Hp + Hp * Op) * wbytes + (Hp + Op) * 4)

        invariant = dict(pipeline_mode=pl.Buffered(1))   # single-buffer: never changes
        grid_spec = pltpu.PrefetchScalarGridSpec(
            num_scalar_prefetch=0,
            grid=(n_btiles, depth),
            in_specs=[
                pl.BlockSpec((tile_b, Dp), lambda i, d: (i, 0)),            # x tile
                pl.BlockSpec((Dp, Hp), lambda i, d: (0, 0), **invariant),   # wp
                pl.BlockSpec((1, Hp), lambda i, d: (0, 0), **invariant),    # bp
                pl.BlockSpec((block_per_group, Hp, Hp),
                             lambda i, d: (d, 0, 0)),                       # group d W
                pl.BlockSpec((block_per_group, 1, Hp),
                             lambda i, d: (d, 0, 0)),                       # group d b
                pl.BlockSpec((Hp, Op), lambda i, d: (0, 0), **invariant),   # wf
                pl.BlockSpec((1, Op), lambda i, d: (0, 0), **invariant),    # bf
            ],
            out_specs=pl.BlockSpec((tile_b, Op), lambda i, d: (i, 0)),
            scratch_shapes=[pltpu.VMEM((tile_b, Hp), jnp.float32)],         # carried h
        )
        dim_sem = ("parallel", "arbitrary")

    out_p = pl.pallas_call(
        kernel,
        out_shape=jax.ShapeDtypeStruct((Bp, Op), jnp.float32),
        grid_spec=grid_spec,
        compiler_params=pltpu.CompilerParams(
            dimension_semantics=dim_sem,
            vmem_limit_bytes=vmem_limit),
        cost_estimate=pl.CostEstimate(
            flops=flops, transcendentals=transcendentals,
            bytes_accessed=bytes_accessed),
    )(x_p, wp, bp, wt, bt, wf, bf)

    return out_p[:B, :O]


# ------------------------- deterministic param init ---------------------------
def init_params(key, input_dim, hidden_dim, output_dim, depth, block_per_group):
    """Mimics torch.nn.Linear default init (uniform +-1/sqrt(fan_in)).
    Weights stored pre-transposed as [in_features, out_features]."""
    n_linear = depth * block_per_group + 2
    ks = jax.random.split(key, 2 * n_linear)

    def linear(kw, kb, fan_in, fan_out):
        bound = 1.0 / (fan_in ** 0.5)
        w = jax.random.uniform(kw, (fan_in, fan_out), jnp.float32, -bound, bound)
        b = jax.random.uniform(kb, (1, fan_out), jnp.float32, -bound, bound)
        return w, b

    wp, bp = linear(ks[0], ks[1], input_dim, hidden_dim)
    wts, bts = [], []
    for l in range(depth * block_per_group):
        w, b = linear(ks[2 + 2 * l], ks[3 + 2 * l], hidden_dim, hidden_dim)
        wts.append(w)
        bts.append(b)
    base = 2 + 2 * depth * block_per_group
    wf, bf = linear(ks[base], ks[base + 1], hidden_dim, output_dim)

    return {
        "wp": wp, "bp": bp,
        "wt": jnp.stack(wts, axis=0),   # [depth*block_per_group, H, H]
        "bt": jnp.stack(bts, axis=0),   # [depth*block_per_group, 1, H]
        "wf": wf, "bf": bf,
    }


# -------------------------------- reference -----------------------------------
def reference_forward(x, params, *, depth, block_per_group, activation="relu",
                      matmul_dtype=jnp.bfloat16):
    """Pure-JAX reference with the same bf16-operand / f32-accumulate matmuls."""
    act = _make_activation(activation)

    def mm(a, w):
        return jnp.dot(a.astype(matmul_dtype), w.astype(matmul_dtype),
                       preferred_element_type=jnp.float32)

    h = mm(x, params["wp"]) + params["bp"]
    for d in range(depth):
        z = h
        t = z
        for j in range(block_per_group):
            l = d * block_per_group + j
            t = mm(act(t), params["wt"][l]) + params["bt"][l]
        h = t + z
    return mm(h, params["wf"]) + params["bf"]


# ---------------------------------- main ---------------------------------------
if __name__ == "__main__":
    INPUT_DIM = 16
    HIDDEN_DIM = 32
    OUTPUT_DIM = 1
    DEPTH = 3
    BLOCK_PER_GROUP = 3
    BATCH = 8
    ACTIVATION = "relu"

    key = jax.random.PRNGKey(0)
    k_x, k_p = jax.random.split(key)

    x = jax.random.normal(k_x, (BATCH, INPUT_DIM), dtype=jnp.float32)
    params = init_params(k_p, INPUT_DIM, HIDDEN_DIM, OUTPUT_DIM, DEPTH,
                         BLOCK_PER_GROUP)

    out = resnet_forward(x, params, depth=DEPTH,
                         block_per_group=BLOCK_PER_GROUP,
                         activation=ACTIVATION)
    out = jax.block_until_ready(out)

    ref = reference_forward(x, params, depth=DEPTH,
                            block_per_group=BLOCK_PER_GROUP,
                            activation=ACTIVATION)
    assert out.shape == (BATCH, OUTPUT_DIM)
    max_err = float(jnp.max(jnp.abs(out - ref)))
    assert jnp.allclose(out, ref, atol=1e-3, rtol=1e-3), f"mismatch: {max_err}"

    print("KERNEL_OK")
</pallas_src>

<mosaic_0001>
module attributes {stable_mosaic.version = 11 : i64} {
  func.func @_resident_kernel(%arg0: i32, %arg1: memref<128x128xbf16, #tpu.memory_space<vmem>>, %arg2: memref<128x128xbf16, #tpu.memory_space<vmem>>, %arg3: memref<1x128xf32, #tpu.memory_space<vmem>>, %arg4: memref<9x128x128xbf16, #tpu.memory_space<vmem>>, %arg5: memref<9x1x128xf32, #tpu.memory_space<vmem>>, %arg6: memref<128x128xbf16, #tpu.memory_space<vmem>>, %arg7: memref<1x128xf32, #tpu.memory_space<vmem>>, %arg8: memref<128x128xf32, #tpu.memory_space<vmem>>) attributes {dimension_semantics = [#tpu.dimension_semantics<parallel>], iteration_bounds = array<i64: 1>, scalar_prefetch = 0 : i64, scratch_operands = 0 : i64, tpu.core_type = #tpu.core_type<tc>, window_params = [{transform_indices = @transform_0, window_bounds = array<i64: 128, 128>}, {pipeline_mode = #tpu.pipeline_mode<synchronous>, transform_indices = @transform_1, window_bounds = array<i64: 128, 128>}, {pipeline_mode = #tpu.pipeline_mode<synchronous>, transform_indices = @transform_2, window_bounds = array<i64: 1, 128>}, {pipeline_mode = #tpu.pipeline_mode<synchronous>, transform_indices = @transform_3, window_bounds = array<i64: 9, 128, 128>}, {pipeline_mode = #tpu.pipeline_mode<synchronous>, transform_indices = @transform_4, window_bounds = array<i64: 9, 1, 128>}, {pipeline_mode = #tpu.pipeline_mode<synchronous>, transform_indices = @transform_5, window_bounds = array<i64: 128, 128>}, {pipeline_mode = #tpu.pipeline_mode<synchronous>, transform_indices = @transform_6, window_bounds = array<i64: 1, 128>}, {transform_indices = @transform_7, window_bounds = array<i64: 128, 128>}]} {
    %c0 = arith.constant 0 : index
    %c0_0 = arith.constant 0 : index
    %0 = vector.load %arg1[%c0, %c0_0] : memref<128x128xbf16, #tpu.memory_space<vmem>>, vector<128x128xbf16>
    %c0_1 = arith.constant 0 : index
    %c0_2 = arith.constant 0 : index
    %1 = vector.load %arg2[%c0_1, %c0_2] : memref<128x128xbf16, #tpu.memory_space<vmem>>, vector<128x128xbf16>
    %cst = arith.constant dense<0.000000e+00> : vector<128x128xf32>
    %2 = tpu.matmul %0, %1, %cst {dimension_numbers = #tpu.dot_dimension_numbers<[1], [0], [0], [1], [0, 0, 1, 1], [], []>} : vector<128x128xbf16>, vector<128x128xbf16>, vector<128x128xf32> -> vector<128x128xf32>
    %c0_3 = arith.constant 0 : index
    %c0_4 = arith.constant 0 : index
    %3 = vector.load %arg3[%c0_3, %c0_4] : memref<1x128xf32, #tpu.memory_space<vmem>>, vector<1x128xf32>
    %4 = vector.broadcast %3 : vector<1x128xf32> to vector<128x128xf32>
    %5 = arith.addf %2, %4 : vector<128x128xf32>
    %cst_5 = arith.constant 0.000000e+00 : f32
    %6 = vector.broadcast %cst_5 : f32 to vector<128x128xf32>
    %7 = arith.maximumf %5, %6 : vector<128x128xf32>
    %8 = arith.truncf %7 : vector<128x128xf32> to vector<128x128xbf16>
    %c0_6 = arith.constant 0 : index
    %c0_7 = arith.constant 0 : index
    %c0_8 = arith.constant 0 : index
    %9 = vector.load %arg4[%c0_6, %c0_7, %c0_8] : memref<9x128x128xbf16, #tpu.memory_space<vmem>>, vector<1x128x128xbf16>
    %10 = vector.shape_cast %9 : vector<1x128x128xbf16> to vector<128x128xbf16>
    %cst_9 = arith.constant dense<0.000000e+00> : vector<128x128xf32>
    %11 = tpu.matmul %8, %10, %cst_9 {dimension_numbers = #tpu.dot_dimension_numbers<[1], [0], [0], [1], [0, 0, 1, 1], [], []>} : vector<128x128xbf16>, vector<128x128xbf16>, vector<128x128xf32> -> vector<128x128xf32>
    %c0_10 = arith.constant 0 : index
    %c0_11 = arith.constant 0 : index
    %c0_12 = arith.constant 0 : index
    %12 = vector.load %arg5[%c0_10, %c0_11, %c0_12] : memref<9x1x128xf32, #tpu.memory_space<vmem>>, vector<1x1x128xf32>
    %13 = vector.shape_cast %12 : vector<1x1x128xf32> to vector<1x128xf32>
    %14 = vector.broadcast %13 : vector<1x128xf32> to vector<128x128xf32>
    %15 = arith.addf %11, %14 : vector<128x128xf32>
    %cst_13 = arith.constant 0.000000e+00 : f32
    %16 = vector.broadcast %cst_13 : f32 to vector<128x128xf32>
    %17 = arith.maximumf %15, %16 : vector<128x128xf32>
    %18 = arith.truncf %17 : vector<128x128xf32> to vector<128x128xbf16>
    %c1 = arith.constant 1 : index
    %c0_14 = arith.constant 0 : index
    %c0_15 = arith.constant 0 : index
    %19 = vector.load %arg4[%c1, %c0_14, %c0_15] : memref<9x128x128xbf16, #tpu.memory_space<vmem>>, vector<1x128x128xbf16>
    %20 = vector.shape_cast %19 : vector<1x128x128xbf16> to vector<128x128xbf16>
    %cst_16 = arith.constant dense<0.000000e+00> : vector<128x128xf32>
    %21 = tpu.matmul %18, %20, %cst_16 {dimension_numbers = #tpu.dot_dimension_numbers<[1], [0], [0], [1], [0, 0, 1, 1], [], []>} : vector<128x128xbf16>, vector<128x128xbf16>, vector<128x128xf32> -> vector<128x128xf32>
    %c1_17 = arith.constant 1 : index
    %c0_18 = arith.constant 0 : index
    %c0_19 = arith.constant 0 : index
    %22 = vector.load %arg5[%c1_17, %c0_18, %c0_19] : memref<9x1x128xf32, #tpu.memory_space<vmem>>, vector<1x1x128xf32>
    %23 = vector.shape_cast %22 : vector<1x1x128xf32> to vector<1x128xf32>
    %24 = vector.broadcast %23 : vector<1x128xf32> to vector<128x128xf32>
    %25 = arith.addf %21, %24 : vector<128x128xf32>
    %cst_20 = arith.constant 0.000000e+00 : f32
    %26 = vector.broadcast %cst_20 : f32 to vector<128x128xf32>
    %27 = arith.maximumf %25, %26 : vector<128x128xf32>
    %28 = arith.truncf %27 : vector<128x128xf32> to vector<128x128xbf16>
    %c2 = arith.constant 2 : index
    %c0_21 = arith.constant 0 : index
    %c0_22 = arith.constant 0 : index
    %29 = vector.load %arg4[%c2, %c0_21, %c0_22] : memref<9x128x128xbf16, #tpu.memory_space<vmem>>, vector<1x128x128xbf16>
    %30 = vector.shape_cast %29 : vector<1x128x128xbf16> to vector<128x128xbf16>
    %cst_23 = arith.constant dense<0.000000e+00> : vector<128x128xf32>
    %31 = tpu.matmul %28, %30, %cst_23 {dimension_numbers = #tpu.dot_dimension_numbers<[1], [0], [0], [1], [0, 0, 1, 1], [], []>} : vector<128x128xbf16>, vector<128x128xbf16>, vector<128x128xf32> -> vector<128x128xf32>
    %c2_24 = arith.constant 2 : index
    %c0_25 = arith.constant 0 : index
    %c0_26 = arith.constant 0 : index
    %32 = vector.load %arg5[%c2_24, %c0_25, %c0_26] : memref<9x1x128xf32, #tpu.memory_space<vmem>>, vector<1x1x128xf32>
    %33 = vector.shape_cast %32 : vector<1x1x128xf32> to vector<1x128xf32>
    %34 = vector.broadcast %33 : vector<1x128xf32> to vector<128x128xf32>
    %35 = arith.addf %31, %34 : vector<128x128xf32>
    %36 = arith.addf %35, %5 : vector<128x128xf32>
    %cst_27 = arith.constant 0.000000e+00 : f32
    %37 = vector.broadcast %cst_27 : f32 to vector<128x128xf32>
    %38 = arith.maximumf %36, %37 : vector<128x128xf32>
    %39 = arith.truncf %38 : vector<128x128xf32> to vector<128x128xbf16>
    %c3 = arith.constant 3 : index
    %c0_28 = arith.constant 0 : index
    %c0_29 = arith.constant 0 : index
    %40 = vector.load %arg4[%c3, %c0_28, %c0_29] : memref<9x128x128xbf16, #tpu.memory_space<vmem>>, vector<1x128x128xbf16>
    %41 = vector.shape_cast %40 : vector<1x128x128xbf16> to vector<128x128xbf16>
    %cst_30 = arith.constant dense<0.000000e+00> : vector<128x128xf32>
    %42 = tpu.matmul %39, %41, %cst_30 {dimension_numbers = #tpu.dot_dimension_numbers<[1], [0], [0], [1], [0, 0, 1, 1], [], []>} : vector<128x128xbf16>, vector<128x128xbf16>, vector<128x128xf32> -> vector<128x128xf32>
    %c3_31 = arith.constant 3 : index
    %c0_32 = arith.constant 0 : index
    %c0_33 = arith.constant 0 : index
    %43 = vector.load %arg5[%c3_31, %c0_32, %c0_33] : memref<9x1x128xf32, #tpu.memory_space<vmem>>, vector<1x1x128xf32>
    %44 = vector.shape_cast %43 : vector<1x1x128xf32> to vector<1x128xf32>
    %45 = vector.broadcast %44 : vector<1x128xf32> to vector<128x128xf32>
    %46 = arith.addf %42, %45 : vector<128x128xf32>
    %cst_34 = arith.constant 0.000000e+00 : f32
    %47 = vector.broadcast %cst_34 : f32 to vector<128x128xf32>
    %48 = arith.maximumf %46, %47 : vector<128x128xf32>
    %49 = arith.truncf %48 : vector<128x128xf32> to vector<128x128xbf16>
    %c4 = arith.constant 4 : index
    %c0_35 = arith.constant 0 : index
    %c0_36 = arith.constant 0 : index
    %50 = vector.load %arg4[%c4, %c0_35, %c0_36] : memref<9x128x128xbf16, #tpu.memory_space<vmem>>, vector<1x128x128xbf16>
    %51 = vector.shape_cast %50 : vector<1x128x128xbf16> to vector<128x128xbf16>
    %cst_37 = arith.constant dense<0.000000e+00> : vector<128x128xf32>
    %52 = tpu.matmul %49, %51, %cst_37 {dimension_numbers = #tpu.dot_dimension_numbers<[1], [0], [0], [1], [0, 0, 1, 1], [], []>} : vector<128x128xbf16>, vector<128x128xbf16>, vector<128x128xf32> -> vector<128x128xf32>
    %c4_38 = arith.constant 4 : index
    %c0_39 = arith.constant 0 : index
    %c0_40 = arith.constant 0 : index
    %53 = vector.load %arg5[%c4_38, %c0_39, %c0_40] : memref<9x1x128xf32, #tpu.memory_space<vmem>>, vector<1x1x128xf32>
    %54 = vector.shape_cast %53 : vector<1x1x128xf32> to vector<1x128xf32>
    %55 = vector.broadcast %54 : vector<1x128xf32> to vector<128x128xf32>
    %56 = arith.addf %52, %55 : vector<128x128xf32>
    %cst_41 = arith.constant 0.000000e+00 : f32
    %57 = vector.broadcast %cst_41 : f32 to vector<128x128xf32>
    %58 = arith.maximumf %56, %57 : vector<128x128xf32>
    %59 = arith.truncf %58 : vector<128x128xf32> to vector<128x128xbf16>
    %c5 = arith.constant 5 : index
    %c0_42 = arith.constant 0 : index
    %c0_43 = arith.constant 0 : index
    %60 = vector.load %arg4[%c5, %c0_42, %c0_43] : memref<9x128x128xbf16, #tpu.memory_space<vmem>>, vector<1x128x128xbf16>
    %61 = vector.shape_cast %60 : vector<1x128x128xbf16> to vector<128x128xbf16>
    %cst_44 = arith.constant dense<0.000000e+00> : vector<128x128xf32>
    %62 = tpu.matmul %59, %61, %cst_44 {dimension_numbers = #tpu.dot_dimension_numbers<[1], [0], [0], [1], [0, 0, 1, 1], [], []>} : vector<128x128xbf16>, vector<128x128xbf16>, vector<128x128xf32> -> vector<128x128xf32>
    %c5_45 = arith.constant 5 : index
    %c0_46 = arith.constant 0 : index
    %c0_47 = arith.constant 0 : index
    %63 = vector.load %arg5[%c5_45, %c0_46, %c0_47] : memref<9x1x128xf32, #tpu.memory_space<vmem>>, vector<1x1x128xf32>
    %64 = vector.shape_cast %63 : vector<1x1x128xf32> to vector<1x128xf32>
    %65 = vector.broadcast %64 : vector<1x128xf32> to vector<128x128xf32>
    %66 = arith.addf %62, %65 : vector<128x128xf32>
    %67 = arith.addf %66, %36 : vector<128x128xf32>
    %cst_48 = arith.constant 0.000000e+00 : f32
    %68 = vector.broadcast %cst_48 : f32 to vector<128x128xf32>
    %69 = arith.maximumf %67, %68 : vector<128x128xf32>
    %70 = arith.truncf %69 : vector<128x128xf32> to vector<128x128xbf16>
    %c6 = arith.constant 6 : index
    %c0_49 = arith.constant 0 : index
    %c0_50 = arith.constant 0 : index
    %71 = vector.load %arg4[%c6, %c0_49, %c0_50] : memref<9x128x128xbf16, #tpu.memory_space<vmem>>, vector<1x128x128xbf16>
    %72 = vector.shape_cast %71 : vector<1x128x128xbf16> to vector<128x128xbf16>
    %cst_51 = arith.constant dense<0.000000e+00> : vector<128x128xf32>
    %73 = tpu.matmul %70, %72, %cst_51 {dimension_numbers = #tpu.dot_dimension_numbers<[1], [0], [0], [1], [0, 0, 1, 1], [], []>} : vector<128x128xbf16>, vector<128x128xbf16>, vector<128x128xf32> -> vector<128x128xf32>
    %c6_52 = arith.constant 6 : index
    %c0_53 = arith.constant 0 : index
    %c0_54 = arith.constant 0 : index
    %74 = vector.load %arg5[%c6_52, %c0_53, %c0_54] : memref<9x1x128xf32, #tpu.memory_space<vmem>>, vector<1x1x128xf32>
    %75 = vector.shape_cast %74 : vector<1x1x128xf32> to vector<1x128xf32>
    %76 = vector.broadcast %75 : vector<1x128xf32> to vector<128x128xf32>
    %77 = arith.addf %73, %76 : vector<128x128xf32>
    %cst_55 = arith.constant 0.000000e+00 : f32
    %78 = vector.broadcast %cst_55 : f32 to vector<128x128xf32>
    %79 = arith.maximumf %77, %78 : vector<128x128xf32>
    %80 = arith.truncf %79 : vector<128x128xf32> to vector<128x128xbf16>
    %c7 = arith.constant 7 : index
    %c0_56 = arith.constant 0 : index
    %c0_57 = arith.constant 0 : index
    %81 = vector.load %arg4[%c7, %c0_56, %c0_57] : memref<9x128x128xbf16, #tpu.memory_space<vmem>>, vector<1x128x128xbf16>
    %82 = vector.shape_cast %81 : vector<1x128x128xbf16> to vector<128x128xbf16>
    %cst_58 = arith.constant dense<0.000000e+00> : vector<128x128xf32>
    %83 = tpu.matmul %80, %82, %cst_58 {dimension_numbers = #tpu.dot_dimension_numbers<[1], [0], [0], [1], [0, 0, 1, 1], [], []>} : vector<128x128xbf16>, vector<128x128xbf16>, vector<128x128xf32> -> vector<128x128xf32>
    %c7_59 = arith.constant 7 : index
    %c0_60 = arith.constant 0 : index
    %c0_61 = arith.constant 0 : index
    %84 = vector.load %arg5[%c7_59, %c0_60, %c0_61] : memref<9x1x128xf32, #tpu.memory_space<vmem>>, vector<1x1x128xf32>
    %85 = vector.shape_cast %84 : vector<1x1x128xf32> to vector<1x128xf32>
    %86 = vector.broadcast %85 : vector<1x128xf32> to vector<128x128xf32>
    %87 = arith.addf %83, %86 : vector<128x128xf32>
    %cst_62 = arith.constant 0.000000e+00 : f32
    %88 = vector.broadcast %cst_62 : f32 to vector<128x128xf32>
    %89 = arith.maximumf %87, %88 : vector<128x128xf32>
    %90 = arith.truncf %89 : vector<128x128xf32> to vector<128x128xbf16>
    %c8 = arith.constant 8 : index
    %c0_63 = arith.constant 0 : index
    %c0_64 = arith.constant 0 : index
    %91 = vector.load %arg4[%c8, %c0_63, %c0_64] : memref<9x128x128xbf16, #tpu.memory_space<vmem>>, vector<1x128x128xbf16>
    %92 = vector.shape_cast %91 : vector<1x128x128xbf16> to vector<128x128xbf16>
    %cst_65 = arith.constant dense<0.000000e+00> : vector<128x128xf32>
    %93 = tpu.matmul %90, %92, %cst_65 {dimension_numbers = #tpu.dot_dimension_numbers<[1], [0], [0], [1], [0, 0, 1, 1], [], []>} : vector<128x128xbf16>, vector<128x128xbf16>, vector<128x128xf32> -> vector<128x128xf32>
    %c8_66 = arith.constant 8 : index
    %c0_67 = arith.constant 0 : index
    %c0_68 = arith.constant 0 : index
    %94 = vector.load %arg5[%c8_66, %c0_67, %c0_68] : memref<9x1x128xf32, #tpu.memory_space<vmem>>, vector<1x1x128xf32>
    %95 = vector.shape_cast %94 : vector<1x1x128xf32> to vector<1x128xf32>
    %96 = vector.broadcast %95 : vector<1x128xf32> to vector<128x128xf32>
    %97 = arith.addf %93, %96 : vector<128x128xf32>
    %98 = arith.addf %97, %67 : vector<128x128xf32>
    %99 = arith.truncf %98 : vector<128x128xf32> to vector<128x128xbf16>
    %c0_69 = arith.constant 0 : index
    %c0_70 = arith.constant 0 : index
    %100 = vector.load %arg6[%c0_69, %c0_70] : memref<128x128xbf16, #tpu.memory_space<vmem>>, vector<128x128xbf16>
    %cst_71 = arith.constant dense<0.000000e+00> : vector<128x128xf32>
    %101 = tpu.matmul %99, %100, %cst_71 {dimension_numbers = #tpu.dot_dimension_numbers<[1], [0], [0], [1], [0, 0, 1, 1], [], []>} : vector<128x128xbf16>, vector<128x128xbf16>, vector<128x128xf32> -> vector<128x128xf32>
    %c0_72 = arith.constant 0 : index
    %c0_73 = arith.constant 0 : index
    %102 = vector.load %arg7[%c0_72, %c0_73] : memref<1x128xf32, #tpu.memory_space<vmem>>, vector<1x128xf32>
    %103 = vector.broadcast %102 : vector<1x128xf32> to vector<128x128xf32>
    %104 = arith.addf %101, %103 : vector<128x128xf32>
    %c0_74 = arith.constant 0 : index
    %c0_75 = arith.constant 0 : index
    %105 = vector.load %arg8[%c0_74, %c0_75] : memref<128x128xf32, #tpu.memory_space<vmem>>, vector<128x128xf32>
    tpu.vector_store %arg8[%c0_74, %c0_75], %104 {strides = array<i32>} : memref<128x128xf32, #tpu.memory_space<vmem>>, vector<128x128xf32>,
    return
  }
  func.func @transform_0(%arg0: i32) -> (i32, i32) {
    %c0_i32 = arith.constant 0 : i32
    %c0_i32_0 = arith.constant 0 : i32
    return %arg0, %c0_i32 : i32, i32
  }
  func.func @transform_1(%arg0: i32) -> (i32, i32) {
    %c0_i32 = arith.constant 0 : i32
    %c0_i32_0 = arith.constant 0 : i32
    %c0_i32_1 = arith.constant 0 : i32
    return %c0_i32, %c0_i32_0 : i32, i32
  }
  func.func @transform_2(%arg0: i32) -> (i32, i32) {
    %c0_i32 = arith.constant 0 : i32
    %c0_i32_0 = arith.constant 0 : i32
    %c0_i32_1 = arith.constant 0 : i32
    return %c0_i32, %c0_i32_0 : i32, i32
  }
  func.func @transform_3(%arg0: i32) -> (i32, i32, i32) {
    %c0_i32 = arith.constant 0 : i32
    %c0_i32_0 = arith.constant 0 : i32
    %c0_i32_1 = arith.constant 0 : i32
    %c0_i32_2 = arith.constant 0 : i32
    return %c0_i32, %c0_i32_0, %c0_i32_1 : i32, i32, i32
  }
  func.func @transform_4(%arg0: i32) -> (i32, i32, i32) {
    %c0_i32 = arith.constant 0 : i32
    %c0_i32_0 = arith.constant 0 : i32
    %c0_i32_1 = arith.constant 0 : i32
    %c0_i32_2 = arith.constant 0 : i32
    return %c0_i32, %c0_i32_0, %c0_i32_1 : i32, i32, i32
  }
  func.func @transform_5(%arg0: i32) -> (i32, i32) {
    %c0_i32 = arith.constant 0 : i32
    %c0_i32_0 = arith.constant 0 : i32
    %c0_i32_1 = arith.constant 0 : i32
    return %c0_i32, %c0_i32_0 : i32, i32
  }
  func.func @transform_6(%arg0: i32) -> (i32, i32) {
    %c0_i32 = arith.constant 0 : i32
    %c0_i32_0 = arith.constant 0 : i32
    %c0_i32_1 = arith.constant 0 : i32
    return %c0_i32, %c0_i32_0 : i32, i32
  }
  func.func @transform_7(%arg0: i32) -> (i32, i32) {
    %c0_i32 = arith.constant 0 : i32
    %c0_i32_0 = arith.constant 0 : i32
    return %arg0, %c0_i32 : i32, i32
  }
}

</mosaic_0001>

<bundles_post_ra>
// kernel: tpu_custom_call.1
= control target key start
LH: loop header
LB: loop body
LE: loop exit
PB: predicated region body
PF: predicated region fallthrough
CT: control target
= control target key end

     0   :  { %12 = vsyncpa [#allocation3], 0  ;;  %s3540_s0 = inlined_call_operand.hbm [shape: bf16[128,128], index: 0, kind: input, shape index: {}]   ;;  %s3541_s1 = inlined_call_operand.hbm [shape: bf16[128,128], index: 1, kind: input, shape index: {}]   ;;  %s3542_s2 = inlined_call_operand.vmem [shape: f32[1,128], index: 2, kind: input, shape index: {}]   ;;  %s3543_s3 = inlined_call_operand.hbm [shape: bf16[9,128,128], index: 3, kind: input, shape index: {}]   ;;  %s3544_s4 = inlined_call_operand.hbm [shape: f32[9,1,128], index: 4, kind: input, shape index: {}]   ;;  %s3545_s5 = inlined_call_operand.hbm [shape: bf16[128,128], index: 5, kind: input, shape index: {}]   ;;  %s3546_s6 = inlined_call_operand.vmem [shape: f32[1,128], index: 6, kind: input, shape index: {}]   ;;  %s3547_s7 = inlined_call_operand.hbm [shape: f32[128,128], index: 7, kind: output, shape index: {}]  }
   0x1   :  { %13 = vsyncpa [#allocation6], 0 }
   0x2   :  { %14 = vsyncpa [#allocation9], 0 }
   0x3   :  { %15 = vsyncpa [#allocation4], 0  ;;  %s3218_s24 = smov [#allocation5]   ;;  %s3219_s26 = smov [#allocation8]  }
   0x4   :  { %s33_s25 = sshll.u32 %s3218_s24, 4  ;;  %s59_s27 = sshll.u32 %s3219_s26, 4  ;;  %s34_s25 = int_to_ptr.vmem [resolvable:$true] %s33_s25  ;;  %s60_s27 = int_to_ptr.vmem [resolvable:$true] %s59_s27 }
   0x5   :  { %s3098_s28 = scalar_lea.vmem %s34_s25, 1024  ;;  %p3103_p1 = scmp.lt.s32.totalorder %s34_s25, %s34_s25 }
   0x6   :  { %p3099_p0 = scmp.ne.s32.totalorder %s34_s25, %s3098_s28  ;;  %p3104_p2 = scmp.lt.s32.totalorder %s3098_s28, %s3098_s28 }
   0x8   :  { %p3105_p3 = por %p3104_p2, %p3103_p1 }
   0xa   :  { %p3106_p4 = pnand %p3105_p3, %p3099_p0 }
   0xc   :  { %3109 = shalt.err (!%p3106_p4)
}
   0xd   :  { %s3220_s29 = smov 64   ;;  %s3221_s30 = smov 4  }
   0xe   :  { %39 = dma.hbm_to_vmem [thread:$0]  %s3541_s1, 1024, %s34_s25, [#allocation6], %s3220_s29, %s3220_s29, %s3221_s30  }
   0xf   :  { %s3118_s10 = scalar_lea.vmem %s60_s27, 144  ;;  %s3122_s11 = scalar_lea.vmem %s60_s27, 160 }
  0x10   :  { %p3119_p5 = scmp.ne.s32.totalorder %s60_s27, %s3118_s10  ;;  %p3123_p6 = scmp.lt.s32.totalorder %s60_s27, %s60_s27 }
  0x11   :  { %p3124_p7 = scmp.lt.s32.totalorder %s3122_s11, %s3118_s10 }
  0x13   :  { %p3125_p8 = por %p3124_p7, %p3123_p6 }
  0x15   :  { %p3126_p9 = pnand %p3125_p8, %p3119_p5 }
  0x17   :  { %3129 = shalt.err (!%p3126_p9)
}
  0x18   :  { %s3222_s12 = smov 16   ;;  %s3223_s13 = smov 1  }
  0x19   :  { %65 = dma.hbm_to_vmem [thread:$0]  %s3544_s4, 144, %s60_s27, [#allocation9], %s3222_s12, %s3222_s12, %s3223_s13  }
  0x1a   :  { %s3224_s16 = smov [#allocation2]   ;;  %s3225_s18 = smov [#allocation7]  }
  0x1b   :  { %s21_s17 = sshll.u32 %s3224_s16, 4  ;;  %s47_s19 = sshll.u32 %s3225_s18, 4  ;;  %s22_s17 = int_to_ptr.vmem [resolvable:$true] %s21_s17  ;;  %s48_s19 = int_to_ptr.vmem [resolvable:$true] %s47_s19 }
  0x1c   :  { %s3138_s1 = scalar_lea.vmem %s22_s17, 1024  ;;  %p3143_p11 = scmp.lt.s32.totalorder %s22_s17, %s22_s17 }
  0x1d   :  { %p3139_p10 = scmp.ne.s32.totalorder %s22_s17, %s3138_s1  ;;  %p3144_p12 = scmp.lt.s32.totalorder %s3138_s1, %s3138_s1 }
  0x1f   :  { %p3145_p13 = por %p3144_p12, %p3143_p11 }
  0x21   :  { %p3146_p0 = pnand %p3145_p13, %p3139_p10 }
  0x23   :  { %3149 = shalt.err (!%p3146_p0)
}
  0x24   :  { %27 = dma.hbm_to_vmem [thread:$0]  %s3540_s0, 1024, %s22_s17, [#allocation3], %s3220_s29, %s3220_s29, %s3221_s30  }
  0x25   :  { %s3158_s4 = scalar_lea.vmem %s48_s19, 9216  ;;  %p3163_p2 = scmp.lt.s32.totalorder %s48_s19, %s48_s19 }
  0x26   :  { %p3159_p1 = scmp.ne.s32.totalorder %s48_s19, %s3158_s4  ;;  %p3164_p3 = scmp.lt.s32.totalorder %s3158_s4, %s3158_s4 }
  0x28   :  { %p3165_p4 = por %p3164_p3, %p3163_p2 }
  0x2a   :  { %p3166_p5 = pnand %p3165_p4, %p3159_p1 }
  0x2c   :  { %3169 = shalt.err (!%p3166_p5)
}
  0x2d   :  { %53 = dma.hbm_to_vmem [thread:$0]  %s3543_s3, 9216, %s48_s19, [#allocation6], %s3220_s29, %s3220_s29, %s3221_s30  }
  0x2e   :  { %s3226_s24 = smov [#allocation10]  }
  0x2f   :  { %s71_s25 = sshll.u32 %s3226_s24, 4  ;;  %s72_s25 = int_to_ptr.vmem [resolvable:$true] %s71_s25 }
  0x30   :  { %s3178_s26 = scalar_lea.vmem %s72_s25, 1024  ;;  %p3183_p7 = scmp.lt.s32.totalorder %s72_s25, %s72_s25 }
  0x31   :  { %p3179_p6 = scmp.ne.s32.totalorder %s72_s25, %s3178_s26  ;;  %p3184_p8 = scmp.lt.s32.totalorder %s3178_s26, %s3178_s26 }
  0x33   :  { %p3185_p9 = por %p3184_p8, %p3183_p7 }
  0x35   :  { %p3186_p10 = pnand %p3185_p9, %p3179_p6 }
  0x37   :  { %3189 = shalt.err (!%p3186_p10)
}
  0x38   :  { %77 = dma.hbm_to_vmem [thread:$0]  %s3545_s5, 1024, %s72_s25, [#allocation9], %s3220_s29, %s3220_s29, %s3221_s30  }
  0x39   :  { %3210 = dma.done.wait [#allocation3], 1024  }
  0x3a   :  { %3211 = vsyncadd [#allocation3], 4294966272 }
  0x3b   :  { %3212 = dma.done.wait [#allocation6], 10240  }
  0x3c   :  { %3213 = vsyncadd [#allocation6], 4294957056 }
  0x3d   :  { %3214 = dma.done.wait [#allocation9], 1168  }
  0x3e   :  { %3215 = vsyncadd [#allocation9], 4294966128  ;;  %v2994_v0 = vld [vmem:[#allocation5 + $0x38] sm:$0xff]   ;;  %v2995_v1 = vld [vmem:[#allocation5 + $0x30] sm:$0xff]  }
  0x3f   :  { %2614 = vmatprep.subr.bf16.mxu0 %v2994_v0  ;;  %v2996_v2 = vld [vmem:[#allocation5 + $0x28] sm:$0xff]   ;;  %v2997_v3 = vld [vmem:[#allocation5 + $0x20] sm:$0xff]   ;;  %v2998_v5 = vld [vmem:[#allocation5 + $0x18] sm:$0xff]  }
  0x40   :  { %2615 = vmatpush3.bf16.msra.mxu0 %v2994_v0  ;;  %v3002_v4 = vld [vmem:[#allocation2] sm:$0xff]   ;;  %v2999_v6 = vld [vmem:[#allocation5 + $0x10] sm:$0xff]   ;;  %v3010_v7 = vld [vmem:[#allocation7 + $0x38] sm:$0xff]  }
  0x41   :  { %2616 = vmatprep.subr.bf16.mxu0 %v2995_v1  ;;  %2630 = vmatprep.mubr.bf16.mxu0 %v3002_v4  ;;  %v3011_v8 = vld [vmem:[#allocation7 + $0x30] sm:$0xff]   ;;  %v3000_v9 = vld [vmem:[#allocation5 + $0x8] sm:$0xff]   ;;  %v3001_v11 = vld [vmem:[#allocation5] sm:$0xff]  }
  0x42   :  { %2646 = vmatprep.subr.bf16.mxu1 %v3010_v7  ;;  %v3012_v10 = vld [vmem:[#allocation7 + $0x28] sm:$0xff]   ;;  %v3013_v12 = vld [vmem:[#allocation7 + $0x20] sm:$0xff]   ;;  %v3014_v13 = vld [vmem:[#allocation7 + $0x18] sm:$0xff]  }
  0x43   :  { %2647 = vmatpush3.bf16.msra.mxu1 %v3010_v7  ;;  %v3003_v14 = vld [vmem:[#allocation2 + $0x8] sm:$0xff]   ;;  %v3004_v15 = vld [vmem:[#allocation2 + $0x10] sm:$0xff]   ;;  %v3005_v16 = vld [vmem:[#allocation2 + $0x18] sm:$0xff]  }
  0x44   :  { %2617 = vmatpush3.bf16.msra.mxu0 %v2995_v1  ;;  %2648 = vmatprep.subr.bf16.mxu1 %v3011_v8  ;;  %v3006_v17 = vld [vmem:[#allocation2 + $0x20] sm:$0xff]   ;;  %v3007_v18 = vld [vmem:[#allocation2 + $0x28] sm:$0xff]   ;;  %v3008_v19 = vld [vmem:[#allocation2 + $0x30] sm:$0xff]  }
  0x45   :  { %2618 = vmatprep.subr.bf16.mxu0 %v2996_v2  ;;  %v3009_v20 = vld [vmem:[#allocation2 + $0x38] sm:$0xff]   ;;  %v3015_v21 = vld [vmem:[#allocation7 + $0x10] sm:$0xff]   ;;  %v3016_v22 = vld [vmem:[#allocation7 + $0x8] sm:$0xff]  }
  0x46   :  { %v3017_v23 = vld [vmem:[#allocation7] sm:$0xff]   ;;  %v3018_v24 = vld [vmem:[#allocation7 + $0x78] sm:$0xff]   ;;  %v3019_v25 = vld [vmem:[#allocation7 + $0x70] sm:$0xff]  }
  0x47   :  { %2649 = vmatpush3.bf16.msra.mxu1 %v3011_v8  ;;  %v3020_v26 = vld [vmem:[#allocation7 + $0x68] sm:$0xff]   ;;  %v3021_v27 = vld [vmem:[#allocation7 + $0x60] sm:$0xff]   ;;  %v3022_v28 = vld [vmem:[#allocation7 + $0x58] sm:$0xff]  }
  0x48   :  { %2619 = vmatpush3.bf16.msra.mxu0 %v2996_v2  ;;  %2650 = vmatprep.subr.bf16.mxu1 %v3012_v10  ;;  %v2331_v31 = vld [vmem:[%s3542_s2] ss:$0 sm:$0xff] }
  0x49   :  { %2620 = vmatprep.subr.bf16.mxu0 %v2997_v3 }
  0x4b   :  { %2651 = vmatpush3.bf16.msra.mxu1 %v3012_v10 }
  0x4c   :  { %2621 = vmatpush3.bf16.msra.mxu0 %v2997_v3  ;;  %2652 = vmatprep.subr.bf16.mxu1 %v3013_v12 }
  0x4d   :  { %2622 = vmatprep.subr.bf16.mxu0 %v2998_v5 }
  0x4f   :  { %2653 = vmatpush3.bf16.msra.mxu1 %v3013_v12 }
  0x50   :  { %2623 = vmatpush3.bf16.msra.mxu0 %v2998_v5  ;;  %2654 = vmatprep.subr.bf16.mxu1 %v3014_v13 }
  0x51   :  { %2624 = vmatprep.subr.bf16.mxu0 %v2999_v6 }
  0x53   :  { %2655 = vmatpush3.bf16.msra.mxu1 %v3014_v13 }
  0x54   :  { %2625 = vmatpush3.bf16.msra.mxu0 %v2999_v6  ;;  %2656 = vmatprep.subr.bf16.mxu1 %v3015_v21 }
  0x55   :  { %2626 = vmatprep.subr.bf16.mxu0 %v3000_v9 }
  0x57   :  { %2657 = vmatpush3.bf16.msra.mxu1 %v3015_v21 }
  0x58   :  { %2627 = vmatpush3.bf16.msra.mxu0 %v3000_v9  ;;  %2658 = vmatprep.subr.bf16.mxu1 %v3016_v22 }
  0x59   :  { %2628 = vmatprep.subr.bf16.mxu0 %v3001_v11 }
  0x5b   :  { %2659 = vmatpush3.bf16.msra.mxu1 %v3016_v22  ;;  %v3023_v22 = vld [vmem:[#allocation7 + $0x50] sm:$0xff]  }
  0x5c   :  { %2629 = vmatpush3.bf16.msra.mxu0 %v3001_v11  ;;  %2660 = vmatprep.subr.bf16.mxu1 %v3017_v23 }
  0x5d   :  { %2678 = vmatprep.subr.bf16.mxu0 %v3018_v24 }
  0x5f   :  { %2631 = vmatmul.mubr.bf16.vlgmr.msra.gmra.mxu0 %v3003_v14  ;;  %2661 = vmatpush3.bf16.msra.mxu1 %v3017_v23  ;;  %v3024_v23 = vld [vmem:[#allocation7 + $0x48] sm:$0xff]  }
  0x60   :  { %2634 = vmatprep.mubr.bf16.mxu0 %v3004_v15  ;;  %2679 = vmatpush3.bf16.msra.mxu0 %v3018_v24  ;;  %v3025_v24 = vld [vmem:[#allocation7 + $0x40] sm:$0xff]  }
  0x61   :  { %2680 = vmatprep.subr.bf16.mxu0 %v3019_v25 }
  0x64   :  { %2681 = vmatpush3.bf16.msra.mxu0 %v3019_v25  ;;  %v3026_v25 = vld [vmem:[#allocation7 + $0xb8] sm:$0xff]  }
  0x65   :  { %2682 = vmatprep.subr.bf16.mxu0 %v3020_v26  ;;  %2710 = vmatprep.subr.bf16.mxu1 %v3026_v25 }
  0x67   :  { %2635 = vmatmul.mubr.bf16.gmra.mxu0 %v3005_v16 }
  0x68   :  { %2638 = vmatprep.mubr.bf16.mxu0 %v3006_v17  ;;  %2683 = vmatpush3.bf16.msra.mxu0 %v3020_v26  ;;  %v3027_v26 = vld [vmem:[#allocation7 + $0xb0] sm:$0xff]  }
  0x69   :  { %2684 = vmatprep.subr.bf16.mxu0 %v3021_v27 }
  0x6c   :  { %2685 = vmatpush3.bf16.msra.mxu0 %v3021_v27  ;;  %v3028_v27 = vld [vmem:[#allocation7 + $0xa8] sm:$0xff]  }
  0x6d   :  { %2686 = vmatprep.subr.bf16.mxu0 %v3022_v28 }
  0x6f   :  { %2639 = vmatmul.mubr.bf16.gmra.mxu0 %v3007_v18 }
  0x70   :  { %2642 = vmatprep.mubr.bf16.mxu0 %v3008_v19  ;;  %2687 = vmatpush3.bf16.msra.mxu0 %v3022_v28  ;;  %v3029_v28 = vld [vmem:[#allocation7 + $0xa0] sm:$0xff]  }
  0x71   :  { %2688 = vmatprep.subr.bf16.mxu0 %v3023_v22 }
  0x74   :  { %2689 = vmatpush3.bf16.msra.mxu0 %v3023_v22 }
  0x75   :  { %2690 = vmatprep.subr.bf16.mxu0 %v3024_v23 }
  0x77   :  { %2643 = vmatmul.mubr.bf16.gmra.mxu0 %v3009_v20 }
  0x78   :  { %2691 = vmatpush3.bf16.msra.mxu0 %v3024_v23 }
  0x79   :  { %2692 = vmatprep.subr.bf16.mxu0 %v3025_v24 }
  0x7c   :  { %2693 = vmatpush3.bf16.msra.mxu0 %v3025_v24 }
 0x11f   :  { %v2632_v29 = vpop.f32.mrf.mxu0 }
 0x120   :  { %v3304_v35 = vadd.f32 %v2632_v29, %v2331_v31  ;;  %v3030_v29 = vld [vmem:[#allocation7 + $0x98] sm:$0xff]  }
 0x121   :  { %v265_v30 = vpop.f32.mrf.mxu0 }
 0x122   :  { %v3300_v33 = vadd.f32 %v2331_v31, %v265_v30  ;;  %v330_v42 = vmax.f32 %v3304_v35, 0.0 }
 0x123   :  { %v2633_v32 = vpop.f32.mrf.mxu0 }
 0x124   :  { %v3302_v34 = vadd.f32 %v2633_v32, %v2331_v31  ;;  %v328_v40 = vmax.f32 %v3300_v33, 0.0  ;;  %v2348_v32 = vld [vmem:[#allocation8] ss:$0 sm:$0xff] }
 0x125   :  { %v268_v36 = vpop.f32.mrf.mxu0 }
 0x126   :  { %v3306_v37 = vadd.f32 %v2331_v31, %v268_v36  ;;  %v331_v38 = vmax.f32 %v3302_v34, 0.0 }
 0x127   :  { %v2636_v39 = vpop.f32.mrf.mxu0 }
 0x128   :  { %v329_v41 = vmax.f32 %v3306_v37, 0.0  ;;  %v345_v46 = vpack.c.bf16 %v331_v38, %v330_v42  ;;  %v3316_v49 = vadd.f32 %v2636_v39, %v2331_v31 }
 0x129   :  { %v281_v43 = vpop.f32.mrf.mxu0 }
 0x12a   :  { %v344_v44 = vpack.c.bf16 %v329_v41, %v328_v40  ;;  %v3312_v47 = vadd.f32 %v2331_v31, %v281_v43  ;;  %v334_v56 = vmax.f32 %v3316_v49, 0.0 }
 0x12b   :  { %v2637_v45 = vpop.f32.mrf.mxu0 }
 0x12c   :  { %v3314_v48 = vadd.f32 %v2637_v45, %v2331_v31  ;;  %2662 = vmatprep.mubr.bf16.mxu1 %v344_v44  ;;  %v332_v54 = vmax.f32 %v3312_v47, 0.0 }
 0x12d   :  { %v284_v50 = vpop.f32.mrf.mxu0  ;;  %2663 = vmatmul.mubr.bf16.vlgmr.msra.gmra.mxu1 %v345_v46 }
 0x12e   :  { %v3318_v51 = vadd.f32 %v2331_v31, %v284_v50  ;;  %v335_v52 = vmax.f32 %v3314_v48, 0.0  ;;  %2711 = vmatpush3.bf16.msra.mxu1 %v3026_v25 }
 0x12f   :  { %v2640_v53 = vpop.f32.mrf.mxu0  ;;  %2712 = vmatprep.subr.bf16.mxu1 %v3027_v26 }
 0x130   :  { %v333_v55 = vmax.f32 %v3318_v51, 0.0  ;;  %v347_v60 = vpack.c.bf16 %v335_v52, %v334_v56  ;;  %v3328_v63 = vadd.f32 %v2640_v53, %v2331_v31 }
 0x131   :  { %v297_v57 = vpop.f32.mrf.mxu0 }
 0x132   :  { %v346_v58 = vpack.c.bf16 %v333_v55, %v332_v54  ;;  %v3324_v61 = vadd.f32 %v2331_v31, %v297_v57  ;;  %v338_v6 = vmax.f32 %v3328_v63, 0.0  ;;  %2713 = vmatpush3.bf16.msra.mxu1 %v3027_v26 }
 0x133   :  { %v2641_v59 = vpop.f32.mrf.mxu0  ;;  %2714 = vmatprep.subr.bf16.mxu1 %v3028_v27 }
 0x134   :  { %v3326_v62 = vadd.f32 %v2641_v59, %v2331_v31  ;;  %2666 = vmatprep.mubr.bf16.mxu1 %v346_v58  ;;  %v336_v4 = vmax.f32 %v3324_v61, 0.0 }
 0x135   :  { %v300_v0 = vpop.f32.mrf.mxu0  ;;  %2667 = vmatmul.mubr.bf16.gmra.mxu1 %v347_v60 }
 0x136   :  { %v3330_v1 = vadd.f32 %v2331_v31, %v300_v0  ;;  %v339_v2 = vmax.f32 %v3326_v62, 0.0  ;;  %2715 = vmatpush3.bf16.msra.mxu1 %v3028_v27 }
 0x137   :  { %v2644_v3 = vpop.f32.mrf.mxu0  ;;  %2716 = vmatprep.subr.bf16.mxu1 %v3029_v28 }
 0x138   :  { %v337_v5 = vmax.f32 %v3330_v1, 0.0  ;;  %v349_v10 = vpack.c.bf16 %v339_v2, %v338_v6  ;;  %v3340_v13 = vadd.f32 %v2644_v3, %v2331_v31 }
 0x139   :  { %v313_v7 = vpop.f32.mrf.mxu0 }
 0x13a   :  { %v348_v8 = vpack.c.bf16 %v337_v5, %v336_v4  ;;  %v3336_v11 = vadd.f32 %v2331_v31, %v313_v7  ;;  %v342_v19 = vmax.f32 %v3340_v13, 0.0  ;;  %2717 = vmatpush3.bf16.msra.mxu1 %v3029_v28 }
 0x13b   :  { %v2645_v9 = vpop.f32.mrf.mxu0  ;;  %2718 = vmatprep.subr.bf16.mxu1 %v3030_v29 }
 0x13c   :  { %v3338_v12 = vadd.f32 %v2645_v9, %v2331_v31  ;;  %2670 = vmatprep.mubr.bf16.mxu1 %v348_v8  ;;  %v340_v17 = vmax.f32 %v3336_v11, 0.0 }
 0x13d   :  { %v316_v14 = vpop.f32.mrf.mxu0  ;;  %2671 = vmatmul.mubr.bf16.gmra.mxu1 %v349_v10 }
 0x13e   :  { %v3342_v15 = vadd.f32 %v2331_v31, %v316_v14  ;;  %v343_v16 = vmax.f32 %v3338_v12, 0.0  ;;  %2719 = vmatpush3.bf16.msra.mxu1 %v3030_v29 }
 0x140   :  { %v341_v18 = vmax.f32 %v3342_v15, 0.0  ;;  %v351_v21 = vpack.c.bf16 %v343_v16, %v342_v19 }
 0x142   :  { %v350_v20 = vpack.c.bf16 %v341_v18, %v340_v17 }
 0x144   :  { %2674 = vmatprep.mubr.bf16.mxu1 %v350_v20 }
 0x145   :  { %2675 = vmatmul.mubr.bf16.gmra.mxu1 %v351_v21 }
 0x1ed   :  { %v2664_v30 = vpop.f32.mrf.mxu1 }
 0x1ee   :  { %v466_v40 = vadd.f32 %v2664_v30, %v2348_v32 }
 0x1ef   :  { %v457_v31 = vpop.f32.mrf.mxu1 }
 0x1f0   :  { %v458_v38 = vadd.f32 %v2348_v32, %v457_v31  ;;  %v522_v50 = vmax.f32 %v466_v40, 0.0 }
 0x1f1   :  { %v2665_v36 = vpop.f32.mrf.mxu1 }
 0x1f2   :  { %v469_v39 = vadd.f32 %v2665_v36, %v2348_v32  ;;  %v520_v45 = vmax.f32 %v458_v38, 0.0 }
 0x1f3   :  { %v460_v41 = vpop.f32.mrf.mxu1 }
 0x1f4   :  { %v461_v42 = vadd.f32 %v2348_v32, %v460_v41  ;;  %v523_v43 = vmax.f32 %v469_v39, 0.0 }
 0x1f5   :  { %v2668_v44 = vpop.f32.mrf.mxu1 }
 0x1f6   :  { %v521_v46 = vmax.f32 %v461_v42, 0.0  ;;  %v537_v54 = vpack.c.bf16 %v523_v43, %v522_v50  ;;  %v482_v58 = vadd.f32 %v2668_v44, %v2348_v32  ;;  %v3031_v44 = vld [vmem:[#allocation7 + $0x90] sm:$0xff]   ;;  %v3034_v50 = vld [vmem:[#allocation7 + $0xf8] sm:$0xff]  }
 0x1f7   :  { %v473_v52 = vpop.f32.mrf.mxu1  ;;  %2720 = vmatprep.subr.bf16.mxu1 %v3031_v44  ;;  %2742 = vmatprep.subr.bf16.mxu0 %v3034_v50 }
 0x1f8   :  { %v536_v53 = vpack.c.bf16 %v521_v46, %v520_v45  ;;  %v474_v56 = vadd.f32 %v2348_v32, %v473_v52  ;;  %v526_v5 = vmax.f32 %v482_v58, 0.0  ;;  %2721 = vmatpush3.bf16.msra.mxu1 %v3031_v44  ;;  %v3032_v45 = vld [vmem:[#allocation7 + $0x88] sm:$0xff]   ;;  %v3033_v46 = vld [vmem:[#allocation7 + $0x80] sm:$0xff]   ;;  %v3035_v52 = vld [vmem:[#allocation7 + $0xf0] sm:$0xff]  }
 0x1f9   :  { %v2669_v55 = vpop.f32.mrf.mxu1  ;;  %2722 = vmatprep.subr.bf16.mxu1 %v3032_v45 }
 0x1fa   :  { %v485_v57 = vadd.f32 %v2669_v55, %v2348_v32  ;;  %2694 = vmatprep.mubr.bf16.mxu0 %v536_v53  ;;  %v524_v3 = vmax.f32 %v474_v56, 0.0  ;;  %v3037_v53 = vld [vmem:[#allocation7 + $0xe0] sm:$0xff]  }
 0x1fb   :  { %v476_v59 = vpop.f32.mrf.mxu1  ;;  %2695 = vmatmul.mubr.bf16.vlgmr.msra.gmra.mxu0 %v537_v54  ;;  %v3038_v54 = vld [vmem:[#allocation7 + $0xd8] sm:$0xff]  }
 0x1fc   :  { %v477_v60 = vadd.f32 %v2348_v32, %v476_v59  ;;  %v527_v0 = vmax.f32 %v485_v57, 0.0  ;;  %2723 = vmatpush3.bf16.msra.mxu1 %v3032_v45  ;;  %2743 = vmatpush3.bf16.msra.mxu0 %v3034_v50  ;;  %v2357_v57 = vld [vmem:[#allocation8 + $0x1] ss:$0 sm:$0xff] }
 0x1fd   :  { %v2672_v2 = vpop.f32.mrf.mxu1  ;;  %2724 = vmatprep.subr.bf16.mxu1 %v3033_v46  ;;  %2744 = vmatprep.subr.bf16.mxu0 %v3035_v52 }
 0x1fe   :  { %v525_v4 = vmax.f32 %v477_v60, 0.0  ;;  %v539_v8 = vpack.c.bf16 %v527_v0, %v526_v5  ;;  %v498_v16 = vadd.f32 %v2672_v2, %v2348_v32 }
 0x1ff   :  { %v489_v6 = vpop.f32.mrf.mxu1 }
 0x200   :  { %v538_v7 = vpack.c.bf16 %v525_v4, %v524_v3  ;;  %v490_v10 = vadd.f32 %v2348_v32, %v489_v6  ;;  %v530_v23 = vmax.f32 %v498_v16, 0.0  ;;  %2725 = vmatpush3.bf16.msra.mxu1 %v3033_v46  ;;  %2745 = vmatpush3.bf16.msra.mxu0 %v3035_v52 }
 0x201   :  { %v2673_v9 = vpop.f32.mrf.mxu1 }
 0x202   :  { %v501_v14 = vadd.f32 %v2673_v9, %v2348_v32  ;;  %2698 = vmatprep.mubr.bf16.mxu0 %v538_v7  ;;  %v528_v21 = vmax.f32 %v490_v10, 0.0 }
 0x203   :  { %v492_v17 = vpop.f32.mrf.mxu1  ;;  %2699 = vmatmul.mubr.bf16.gmra.mxu0 %v539_v8 }
 0x204   :  { %v493_v18 = vadd.f32 %v2348_v32, %v492_v17  ;;  %v531_v19 = vmax.f32 %v501_v14, 0.0 }
 0x205   :  { %v2676_v20 = vpop.f32.mrf.mxu1 }
 0x206   :  { %v529_v22 = vmax.f32 %v493_v18, 0.0  ;;  %v541_v26 = vpack.c.bf16 %v531_v19, %v530_v23  ;;  %v514_v30 = vadd.f32 %v2676_v20, %v2348_v32 }
 0x207   :  { %v505_v24 = vpop.f32.mrf.mxu1 }
 0x208   :  { %v540_v25 = vpack.c.bf16 %v529_v22, %v528_v21  ;;  %v506_v28 = vadd.f32 %v2348_v32, %v505_v24  ;;  %v534_v41 = vmax.f32 %v514_v30, 0.0 }
 0x209   :  { %v2677_v27 = vpop.f32.mrf.mxu1 }
 0x20a   :  { %v517_v29 = vadd.f32 %v2677_v27, %v2348_v32  ;;  %2702 = vmatprep.mubr.bf16.mxu0 %v540_v25  ;;  %v532_v39 = vmax.f32 %v506_v28, 0.0 }
 0x20b   :  { %v508_v31 = vpop.f32.mrf.mxu1  ;;  %2703 = vmatmul.mubr.bf16.gmra.mxu0 %v541_v26 }
 0x20c   :  { %v509_v36 = vadd.f32 %v2348_v32, %v508_v31  ;;  %v535_v38 = vmax.f32 %v517_v29, 0.0  ;;  %v3036_v32 = vld [vmem:[#allocation7 + $0xe8] sm:$0xff]  }
 0x20d   :  { %2746 = vmatprep.subr.bf16.mxu0 %v3036_v32 }
 0x20e   :  { %v533_v40 = vmax.f32 %v509_v36, 0.0  ;;  %v543_v43 = vpack.c.bf16 %v535_v38, %v534_v41  ;;  %2747 = vmatpush3.bf16.msra.mxu0 %v3036_v32 }
 0x20f   :  { %2748 = vmatprep.subr.bf16.mxu0 %v3037_v53 }
 0x210   :  { %v542_v42 = vpack.c.bf16 %v533_v40, %v532_v39 }
 0x212   :  { %2706 = vmatprep.mubr.bf16.mxu0 %v542_v42  ;;  %2749 = vmatpush3.bf16.msra.mxu0 %v3037_v53 }
 0x213   :  { %2707 = vmatmul.mubr.bf16.gmra.mxu0 %v543_v43  ;;  %2750 = vmatprep.subr.bf16.mxu0 %v3038_v54 }
 0x216   :  { %2751 = vmatpush3.bf16.msra.mxu0 %v3038_v54 }
 0x2bb   :  { %v2696_v55 = vpop.f32.mrf.mxu0 }
 0x2bc   :  { %v660_v0 = vadd.f32 %v2696_v55, %v2357_v57 }
 0x2bd   :  { %v651_v56 = vpop.f32.mrf.mxu0 }
 0x2be   :  { %v652_v59 = vadd.f32 %v2357_v57, %v651_v56  ;;  %v716_v8 = vmax.f32 %v660_v0, 0.0 }
 0x2bf   :  { %v2697_v58 = vpop.f32.mrf.mxu0 }
 0x2c0   :  { %v663_v60 = vadd.f32 %v2697_v58, %v2357_v57  ;;  %v714_v6 = vmax.f32 %v652_v59, 0.0 }
 0x2c1   :  { %v654_v2 = vpop.f32.mrf.mxu0 }
 0x2c2   :  { %v655_v3 = vadd.f32 %v2357_v57, %v654_v2  ;;  %v717_v4 = vmax.f32 %v663_v60, 0.0 }
 0x2c3   :  { %v2700_v5 = vpop.f32.mrf.mxu0 }
 0x2c4   :  { %v715_v7 = vmax.f32 %v655_v3, 0.0  ;;  %v731_v14 = vpack.c.bf16 %v717_v4, %v716_v8  ;;  %v676_v19 = vadd.f32 %v2700_v5, %v2357_v57  ;;  %v3039_v5 = vld [vmem:[#allocation7 + $0xd0] sm:$0xff]   ;;  %v3042_v8 = vld [vmem:[#allocation7 + $0x138] sm:$0xff]  }
 0x2c5   :  { %v667_v9 = vpop.f32.mrf.mxu0  ;;  %2752 = vmatprep.subr.bf16.mxu0 %v3039_v5  ;;  %2774 = vmatprep.subr.bf16.mxu1 %v3042_v8 }
 0x2c6   :  { %v730_v10 = vpack.c.bf16 %v715_v7, %v714_v6  ;;  %v668_v17 = vadd.f32 %v2357_v57, %v667_v9  ;;  %v720_v26 = vmax.f32 %v676_v19, 0.0  ;;  %2753 = vmatpush3.bf16.msra.mxu0 %v3039_v5  ;;  %v3040_v6 = vld [vmem:[#allocation7 + $0xc8] sm:$0xff]   ;;  %v3041_v7 = vld [vmem:[#allocation7 + $0xc0] sm:$0xff]   ;;  %v3043_v9 = vld [vmem:[#allocation7 + $0x130] sm:$0xff]  }
 0x2c7   :  { %v2701_v16 = vpop.f32.mrf.mxu0  ;;  %2754 = vmatprep.subr.bf16.mxu0 %v3040_v6 }
 0x2c8   :  { %v679_v18 = vadd.f32 %v2701_v16, %v2357_v57  ;;  %2726 = vmatprep.mubr.bf16.mxu1 %v730_v10  ;;  %v718_v24 = vmax.f32 %v668_v17, 0.0  ;;  %v3045_v10 = vld [vmem:[#allocation7 + $0x120] sm:$0xff]  }
 0x2c9   :  { %v670_v20 = vpop.f32.mrf.mxu0  ;;  %2727 = vmatmul.mubr.bf16.vlgmr.msra.gmra.mxu1 %v731_v14  ;;  %v3046_v14 = vld [vmem:[#allocation7 + $0x118] sm:$0xff]   ;;  %v3348_v17 = vld [vmem:[#allocation8 + $0x2] ss:$0 sm:$0xff] }
 0x2ca   :  { %v671_v21 = vadd.f32 %v2357_v57, %v670_v20  ;;  %v721_v22 = vmax.f32 %v679_v18, 0.0  ;;  %2755 = vmatpush3.bf16.msra.mxu0 %v3040_v6  ;;  %2775 = vmatpush3.bf16.msra.mxu1 %v3042_v8 }
 0x2cb   :  { %v2704_v23 = vpop.f32.mrf.mxu0  ;;  %2756 = vmatprep.subr.bf16.mxu0 %v3041_v7  ;;  %2776 = vmatprep.subr.bf16.mxu1 %v3043_v9 }
 0x2cc   :  { %v719_v25 = vmax.f32 %v671_v21, 0.0  ;;  %v733_v29 = vpack.c.bf16 %v721_v22, %v720_v26  ;;  %v692_v38 = vadd.f32 %v2704_v23, %v2357_v57 }
 0x2cd   :  { %v683_v27 = vpop.f32.mrf.mxu0 }
 0x2ce   :  { %v732_v28 = vpack.c.bf16 %v719_v25, %v718_v24  ;;  %v684_v31 = vadd.f32 %v2357_v57, %v683_v27  ;;  %v724_v45 = vmax.f32 %v692_v38, 0.0  ;;  %2757 = vmatpush3.bf16.msra.mxu0 %v3041_v7  ;;  %2777 = vmatpush3.bf16.msra.mxu1 %v3043_v9 }
 0x2cf   :  { %v2705_v30 = vpop.f32.mrf.mxu0 }
 0x2d0   :  { %v695_v36 = vadd.f32 %v2705_v30, %v2357_v57  ;;  %2730 = vmatprep.mubr.bf16.mxu1 %v732_v28  ;;  %v722_v43 = vmax.f32 %v684_v31, 0.0 }
 0x2d1   :  { %v686_v39 = vpop.f32.mrf.mxu0  ;;  %2731 = vmatmul.mubr.bf16.gmra.mxu1 %v733_v29 }
 0x2d2   :  { %v687_v40 = vadd.f32 %v2357_v57, %v686_v39  ;;  %v725_v41 = vmax.f32 %v695_v36, 0.0 }
 0x2d3   :  { %v2708_v42 = vpop.f32.mrf.mxu0 }
 0x2d4   :  { %v723_v44 = vmax.f32 %v687_v40, 0.0  ;;  %v735_v52 = vpack.c.bf16 %v725_v41, %v724_v45  ;;  %v708_v55 = vadd.f32 %v2708_v42, %v2357_v57 }
 0x2d5   :  { %v699_v46 = vpop.f32.mrf.mxu0 }
 0x2d6   :  { %v734_v50 = vpack.c.bf16 %v723_v44, %v722_v43  ;;  %v700_v53 = vadd.f32 %v2357_v57, %v699_v46  ;;  %v728_v2 = vmax.f32 %v708_v55, 0.0 }
 0x2d7   :  { %v2709_v32 = vpop.f32.mrf.mxu0 }
 0x2d8   :  { %v711_v54 = vadd.f32 %v2709_v32, %v2357_v57  ;;  %2734 = vmatprep.mubr.bf16.mxu1 %v734_v50  ;;  %v726_v60 = vmax.f32 %v700_v53, 0.0 }
 0x2d9   :  { %v702_v56 = vpop.f32.mrf.mxu0  ;;  %2735 = vmatmul.mubr.bf16.gmra.mxu1 %v735_v52 }
 0x2da   :  { %v703_v58 = vadd.f32 %v2357_v57, %v702_v56  ;;  %v729_v59 = vmax.f32 %v711_v54, 0.0  ;;  %v3044_v57 = vld [vmem:[#allocation7 + $0x128] sm:$0xff]  }
 0x2db   :  { %2778 = vmatprep.subr.bf16.mxu1 %v3044_v57 }
 0x2dc   :  { %v727_v0 = vmax.f32 %v703_v58, 0.0  ;;  %v737_v4 = vpack.c.bf16 %v729_v59, %v728_v2  ;;  %2779 = vmatpush3.bf16.msra.mxu1 %v3044_v57 }
 0x2dd   :  { %2780 = vmatprep.subr.bf16.mxu1 %v3045_v10 }
 0x2de   :  { %v736_v3 = vpack.c.bf16 %v727_v0, %v726_v60 }
 0x2e0   :  { %2738 = vmatprep.mubr.bf16.mxu1 %v736_v3  ;;  %2781 = vmatpush3.bf16.msra.mxu1 %v3045_v10 }
 0x2e1   :  { %2739 = vmatmul.mubr.bf16.gmra.mxu1 %v737_v4  ;;  %2782 = vmatprep.subr.bf16.mxu1 %v3046_v14 }
 0x2e4   :  { %2783 = vmatpush3.bf16.msra.mxu1 %v3046_v14 }
 0x389   :  { %v2728_v16 = vpop.f32.mrf.mxu1 }
 0x38a   :  { %v854_v20 = vadd.f32 %v2728_v16, %v3348_v17 }
 0x38b   :  { %v845_v18 = vpop.f32.mrf.mxu1 }
 0x38c   :  { %v846_v19 = vadd.f32 %v3348_v17, %v845_v18  ;;  %v3361_v27 = vadd.f32 %v854_v20, %v3304_v35 }
 0x38d   :  { %v2729_v21 = vpop.f32.mrf.mxu1 }
 0x38e   :  { %v857_v22 = vadd.f32 %v2729_v21, %v3348_v17  ;;  %v3354_v24 = vadd.f32 %v846_v19, %v3300_v33 }
 0x38f   :  { %v848_v23 = vpop.f32.mrf.mxu1 }
 0x390   :  { %v3357_v25 = vadd.f32 %v857_v22, %v3302_v34  ;;  %v849_v26 = vadd.f32 %v3348_v17, %v848_v23  ;;  %v924_v36 = vmax.f32 %v3354_v24, 0.0  ;;  %v926_v34 = vmax.f32 %v3361_v27, 0.0 }
 0x391   :  { %v2732_v28 = vpop.f32.mrf.mxu1 }
 0x392   :  { %v3364_v29 = vadd.f32 %v849_v26, %v3306_v37  ;;  %v927_v30 = vmax.f32 %v3357_v25, 0.0  ;;  %v870_v39 = vadd.f32 %v2732_v28, %v3348_v17 }
 0x393   :  { %v861_v31 = vpop.f32.mrf.mxu1 }
 0x394   :  { %v925_v33 = vmax.f32 %v3364_v29, 0.0  ;;  %v862_v38 = vadd.f32 %v3348_v17, %v861_v31  ;;  %v941_v42 = vpack.c.bf16 %v927_v30, %v926_v34  ;;  %v3381_v46 = vadd.f32 %v870_v39, %v3316_v49  ;;  %v3053_v34 = vld [vmem:[#allocation7 + $0x160] sm:$0xff]   ;;  %v3054_v39 = vld [vmem:[#allocation7 + $0x158] sm:$0xff]  }
 0x395   :  { %v2733_v40 = vpop.f32.mrf.mxu1 }
 0x396   :  { %v873_v35 = vadd.f32 %v2733_v40, %v3348_v17  ;;  %v940_v41 = vpack.c.bf16 %v925_v33, %v924_v36  ;;  %v3374_v43 = vadd.f32 %v862_v38, %v3312_v47  ;;  %v930_v55 = vmax.f32 %v3381_v46, 0.0  ;;  %v3050_v36 = vld [vmem:[#allocation7 + $0x178] sm:$0xff]   ;;  %v3051_v33 = vld [vmem:[#allocation7 + $0x170] sm:$0xff]   ;;  %v3052_v38 = vld [vmem:[#allocation7 + $0x168] sm:$0xff]  }
 0x397   :  { %v864_v37 = vpop.f32.mrf.mxu1  ;;  %2806 = vmatprep.subr.bf16.mxu0 %v3050_v36 }
 0x398   :  { %v3377_v44 = vadd.f32 %v873_v35, %v3314_v48  ;;  %v865_v45 = vadd.f32 %v3348_v17, %v864_v37  ;;  %2758 = vmatprep.mubr.bf16.mxu0 %v940_v41  ;;  %v928_v47 = vmax.f32 %v3374_v43, 0.0  ;;  %v2375_v41 = vld [vmem:[#allocation8 + $0x3] ss:$0 sm:$0xff] }
 0x399   :  { %v2736_v50 = vpop.f32.mrf.mxu1  ;;  %2759 = vmatmul.mubr.bf16.vlgmr.msra.gmra.mxu0 %v941_v42 }
 0x39a   :  { %v3384_v52 = vadd.f32 %v865_v45, %v3318_v51  ;;  %v931_v32 = vmax.f32 %v3377_v44, 0.0  ;;  %v886_v56 = vadd.f32 %v2736_v50, %v3348_v17  ;;  %2807 = vmatpush3.bf16.msra.mxu0 %v3050_v36 }
 0x39b   :  { %v877_v53 = vpop.f32.mrf.mxu1  ;;  %2808 = vmatprep.subr.bf16.mxu0 %v3051_v33 }
 0x39c   :  { %v929_v54 = vmax.f32 %v3384_v52, 0.0  ;;  %v878_v48 = vadd.f32 %v3348_v17, %v877_v53  ;;  %v943_v51 = vpack.c.bf16 %v931_v32, %v930_v55  ;;  %v3401_v4 = vadd.f32 %v886_v56, %v3328_v63 }
 0x39d   :  { %v2737_v49 = vpop.f32.mrf.mxu1 }
 0x39e   :  { %v889_v58 = vadd.f32 %v2737_v49, %v3348_v17  ;;  %v942_v59 = vpack.c.bf16 %v929_v54, %v928_v47  ;;  %v3394_v0 = vadd.f32 %v878_v48, %v3324_v61  ;;  %v934_v57 = vmax.f32 %v3401_v4, 0.0  ;;  %2809 = vmatpush3.bf16.msra.mxu0 %v3051_v33 }
 0x39f   :  { %v880_v60 = vpop.f32.mrf.mxu1  ;;  %2810 = vmatprep.subr.bf16.mxu0 %v3052_v38 }
 0x3a0   :  { %v3397_v2 = vadd.f32 %v889_v58, %v3326_v62  ;;  %v881_v3 = vadd.f32 %v3348_v17, %v880_v60  ;;  %2762 = vmatprep.mubr.bf16.mxu0 %v942_v59  ;;  %v932_v61 = vmax.f32 %v3394_v0, 0.0 }
 0x3a1   :  { %v2740_v5 = vpop.f32.mrf.mxu1  ;;  %2763 = vmatmul.mubr.bf16.gmra.mxu0 %v943_v51 }
 0x3a2   :  { %v3404_v6 = vadd.f32 %v881_v3, %v3330_v1  ;;  %v935_v7 = vmax.f32 %v3397_v2, 0.0  ;;  %v902_v10 = vadd.f32 %v2740_v5, %v3348_v17  ;;  %2811 = vmatpush3.bf16.msra.mxu0 %v3052_v38 }
 0x3a3   :  { %v893_v8 = vpop.f32.mrf.mxu1  ;;  %2812 = vmatprep.subr.bf16.mxu0 %v3053_v34 }
 0x3a4   :  { %v933_v9 = vmax.f32 %v3404_v6, 0.0  ;;  %v894_v62 = vadd.f32 %v3348_v17, %v893_v8  ;;  %v945_v1 = vpack.c.bf16 %v935_v7, %v934_v57  ;;  %v3421_v22 = vadd.f32 %v902_v10, %v3340_v13  ;;  %v3048_v13 = vld [vmem:[#allocation7 + $0x108] sm:$0xff]  }
 0x3a5   :  { %v2741_v63 = vpop.f32.mrf.mxu1 }
 0x3a6   :  { %v905_v14 = vadd.f32 %v2741_v63, %v3348_v17  ;;  %v944_v16 = vpack.c.bf16 %v933_v9, %v932_v61  ;;  %v3414_v19 = vadd.f32 %v894_v62, %v3336_v11  ;;  %v938_v30 = vmax.f32 %v3421_v22, 0.0  ;;  %2813 = vmatpush3.bf16.msra.mxu0 %v3053_v34 }
 0x3a7   :  { %v896_v18 = vpop.f32.mrf.mxu1  ;;  %2814 = vmatprep.subr.bf16.mxu0 %v3054_v39 }
 0x3a8   :  { %v3417_v20 = vadd.f32 %v905_v14, %v3338_v12  ;;  %v897_v21 = vadd.f32 %v3348_v17, %v896_v18  ;;  %2766 = vmatprep.mubr.bf16.mxu0 %v944_v16  ;;  %v936_v28 = vmax.f32 %v3414_v19, 0.0  ;;  %v3047_v17 = vld [vmem:[#allocation7 + $0x110] sm:$0xff]  }
 0x3a9   :  { %2767 = vmatmul.mubr.bf16.gmra.mxu0 %v945_v1  ;;  %2784 = vmatprep.subr.bf16.mxu1 %v3047_v17 }
 0x3aa   :  { %v3424_v23 = vadd.f32 %v897_v21, %v3342_v15  ;;  %v939_v26 = vmax.f32 %v3417_v20, 0.0  ;;  %2785 = vmatpush3.bf16.msra.mxu1 %v3047_v17  ;;  %v3049_v15 = vld [vmem:[#allocation7 + $0x100] sm:$0xff]   ;;  %2815 = vmatpush3.bf16.msra.mxu0 %v3054_v39 }
 0x3ab   :  { %2786 = vmatprep.subr.bf16.mxu1 %v3048_v13 }
 0x3ac   :  { %v937_v11 = vmax.f32 %v3424_v23, 0.0  ;;  %v947_v31 = vpack.c.bf16 %v939_v26, %v938_v30 }
 0x3ae   :  { %v946_v12 = vpack.c.bf16 %v937_v11, %v936_v28  ;;  %2787 = vmatpush3.bf16.msra.mxu1 %v3048_v13 }
 0x3af   :  { %2788 = vmatprep.subr.bf16.mxu1 %v3049_v15 }
 0x3b0   :  { %2770 = vmatprep.mubr.bf16.mxu0 %v946_v12 }
 0x3b1   :  { %2771 = vmatmul.mubr.bf16.gmra.mxu0 %v947_v31 }
 0x3b2   :  { %2789 = vmatpush3.bf16.msra.mxu1 %v3049_v15 }
 0x459   :  { %v2760_v40 = vpop.f32.mrf.mxu0 }
 0x45a   :  { %v1064_v50 = vadd.f32 %v2760_v40, %v2375_v41 }
 0x45b   :  { %v1055_v35 = vpop.f32.mrf.mxu0 }
 0x45c   :  { %v1056_v37 = vadd.f32 %v2375_v41, %v1055_v35  ;;  %v1120_v56 = vmax.f32 %v1064_v50, 0.0 }
 0x45d   :  { %v2761_v42 = vpop.f32.mrf.mxu0 }
 0x45e   :  { %v1067_v45 = vadd.f32 %v2761_v42, %v2375_v41  ;;  %v1118_v48 = vmax.f32 %v1056_v37, 0.0 }
 0x45f   :  { %v1058_v32 = vpop.f32.mrf.mxu0 }
 0x460   :  { %v1059_v53 = vadd.f32 %v2375_v41, %v1058_v32  ;;  %v1121_v47 = vmax.f32 %v1067_v45, 0.0 }
 0x461   :  { %v2764_v54 = vpop.f32.mrf.mxu0 }
 0x462   :  { %v1119_v55 = vmax.f32 %v1059_v53, 0.0  ;;  %v1135_v59 = vpack.c.bf16 %v1121_v47, %v1120_v56  ;;  %v1080_v5 = vadd.f32 %v2764_v54, %v2375_v41  ;;  %v3055_v54 = vld [vmem:[#allocation7 + $0x150] sm:$0xff]   ;;  %v3058_v56 = vld [vmem:[#allocation7 + $0x1b8] sm:$0xff]  }
 0x463   :  { %v1071_v49 = vpop.f32.mrf.mxu0  ;;  %2816 = vmatprep.subr.bf16.mxu0 %v3055_v54  ;;  %2838 = vmatprep.subr.bf16.mxu1 %v3058_v56 }
 0x464   :  { %v1134_v58 = vpack.c.bf16 %v1119_v55, %v1118_v48  ;;  %v1072_v51 = vadd.f32 %v2375_v41, %v1071_v49  ;;  %v1124_v10 = vmax.f32 %v1080_v5, 0.0  ;;  %2817 = vmatpush3.bf16.msra.mxu0 %v3055_v54  ;;  %v3056_v48 = vld [vmem:[#allocation7 + $0x148] sm:$0xff]   ;;  %v3057_v55 = vld [vmem:[#allocation7 + $0x140] sm:$0xff]   ;;  %v3059_v49 = vld [vmem:[#allocation7 + $0x1b0] sm:$0xff]  }
 0x465   :  { %v2765_v60 = vpop.f32.mrf.mxu0  ;;  %2818 = vmatprep.subr.bf16.mxu0 %v3056_v48 }
 0x466   :  { %v1083_v3 = vadd.f32 %v2765_v60, %v2375_v41  ;;  %2790 = vmatprep.mubr.bf16.mxu1 %v1134_v58  ;;  %v1122_v62 = vmax.f32 %v1072_v51, 0.0  ;;  %v3061_v58 = vld [vmem:[#allocation7 + $0x1a0] sm:$0xff]  }
 0x467   :  { %v1074_v7 = vpop.f32.mrf.mxu0  ;;  %2791 = vmatmul.mubr.bf16.vlgmr.msra.gmra.mxu1 %v1135_v59  ;;  %v3062_v59 = vld [vmem:[#allocation7 + $0x198] sm:$0xff]  }
 0x468   :  { %v1075_v8 = vadd.f32 %v2375_v41, %v1074_v7  ;;  %v1125_v61 = vmax.f32 %v1083_v3, 0.0  ;;  %2819 = vmatpush3.bf16.msra.mxu0 %v3056_v48  ;;  %2839 = vmatpush3.bf16.msra.mxu1 %v3058_v56  ;;  %v2384_v3 = vld [vmem:[#allocation8 + $0x4] ss:$0 sm:$0xff] }
 0x469   :  { %v2768_v9 = vpop.f32.mrf.mxu0  ;;  %2820 = vmatprep.subr.bf16.mxu0 %v3057_v55  ;;  %2840 = vmatprep.subr.bf16.mxu1 %v3059_v49 }
 0x46a   :  { %v1123_v57 = vmax.f32 %v1075_v8, 0.0  ;;  %v1137_v16 = vpack.c.bf16 %v1125_v61, %v1124_v10  ;;  %v1096_v26 = vadd.f32 %v2768_v9, %v2375_v41 }
 0x46b   :  { %v1087_v63 = vpop.f32.mrf.mxu0 }
 0x46c   :  { %v1136_v14 = vpack.c.bf16 %v1123_v57, %v1122_v62  ;;  %v1088_v1 = vadd.f32 %v2375_v41, %v1087_v63  ;;  %v1128_v13 = vmax.f32 %v1096_v26, 0.0  ;;  %2821 = vmatpush3.bf16.msra.mxu0 %v3057_v55  ;;  %2841 = vmatpush3.bf16.msra.mxu1 %v3059_v49 }
 0x46d   :  { %v2769_v18 = vpop.f32.mrf.mxu0 }
 0x46e   :  { %v1099_v21 = vadd.f32 %v2769_v18, %v2375_v41  ;;  %2794 = vmatprep.mubr.bf16.mxu1 %v1136_v14  ;;  %v1126_v31 = vmax.f32 %v1088_v1, 0.0 }
 0x46f   :  { %v1090_v28 = vpop.f32.mrf.mxu0  ;;  %2795 = vmatmul.mubr.bf16.gmra.mxu1 %v1137_v16 }
 0x470   :  { %v1091_v11 = vadd.f32 %v2375_v41, %v1090_v28  ;;  %v1129_v30 = vmax.f32 %v1099_v21, 0.0 }
 0x471   :  { %v2772_v12 = vpop.f32.mrf.mxu0 }
 0x472   :  { %v1127_v17 = vmax.f32 %v1091_v11, 0.0  ;;  %v1139_v33 = vpack.c.bf16 %v1129_v30, %v1128_v13  ;;  %v1112_v40 = vadd.f32 %v2772_v12, %v2375_v41 }
 0x473   :  { %v1103_v15 = vpop.f32.mrf.mxu0 }
 0x474   :  { %v1138_v36 = vpack.c.bf16 %v1127_v17, %v1126_v31  ;;  %v1104_v34 = vadd.f32 %v2375_v41, %v1103_v15  ;;  %v1132_v32 = vmax.f32 %v1112_v40, 0.0 }
 0x475   :  { %v2773_v38 = vpop.f32.mrf.mxu0 }
 0x476   :  { %v1115_v39 = vadd.f32 %v2773_v38, %v2375_v41  ;;  %2798 = vmatprep.mubr.bf16.mxu1 %v1138_v36  ;;  %v1130_v45 = vmax.f32 %v1104_v34, 0.0 }
 0x477   :  { %v1106_v35 = vpop.f32.mrf.mxu0  ;;  %2799 = vmatmul.mubr.bf16.gmra.mxu1 %v1139_v33 }
 0x478   :  { %v1107_v42 = vadd.f32 %v2375_v41, %v1106_v35  ;;  %v1133_v37 = vmax.f32 %v1115_v39, 0.0  ;;  %v3060_v41 = vld [vmem:[#allocation7 + $0x1a8] sm:$0xff]  }
 0x479   :  { %2842 = vmatprep.subr.bf16.mxu1 %v3060_v41 }
 0x47a   :  { %v1131_v50 = vmax.f32 %v1107_v42, 0.0  ;;  %v1141_v47 = vpack.c.bf16 %v1133_v37, %v1132_v32  ;;  %2843 = vmatpush3.bf16.msra.mxu1 %v3060_v41 }
 0x47b   :  { %2844 = vmatprep.subr.bf16.mxu1 %v3061_v58 }
 0x47c   :  { %v1140_v53 = vpack.c.bf16 %v1131_v50, %v1130_v45 }
 0x47e   :  { %2802 = vmatprep.mubr.bf16.mxu1 %v1140_v53  ;;  %2845 = vmatpush3.bf16.msra.mxu1 %v3061_v58 }
 0x47f   :  { %2803 = vmatmul.mubr.bf16.gmra.mxu1 %v1141_v47  ;;  %2846 = vmatprep.subr.bf16.mxu1 %v3062_v59 }
 0x482   :  { %2847 = vmatpush3.bf16.msra.mxu1 %v3062_v59 }
 0x527   :  { %v2792_v60 = vpop.f32.mrf.mxu1 }
 0x528   :  { %v1258_v61 = vadd.f32 %v2792_v60, %v2384_v3 }
 0x529   :  { %v1249_v51 = vpop.f32.mrf.mxu1 }
 0x52a   :  { %v1250_v7 = vadd.f32 %v2384_v3, %v1249_v51  ;;  %v1314_v16 = vmax.f32 %v1258_v61, 0.0 }
 0x52b   :  { %v2793_v5 = vpop.f32.mrf.mxu1 }
 0x52c   :  { %v1261_v8 = vadd.f32 %v2793_v5, %v2384_v3  ;;  %v1312_v63 = vmax.f32 %v1250_v7, 0.0 }
 0x52d   :  { %v1252_v9 = vpop.f32.mrf.mxu1 }
 0x52e   :  { %v1253_v62 = vadd.f32 %v2384_v3, %v1252_v9  ;;  %v1315_v57 = vmax.f32 %v1261_v8, 0.0 }
 0x52f   :  { %v2796_v10 = vpop.f32.mrf.mxu1 }
 0x530   :  { %v1313_v14 = vmax.f32 %v1253_v62, 0.0  ;;  %v1329_v21 = vpack.c.bf16 %v1315_v57, %v1314_v16  ;;  %v1274_v30 = vadd.f32 %v2796_v10, %v2384_v3  ;;  %v3063_v10 = vld [vmem:[#allocation7 + $0x190] sm:$0xff]   ;;  %v3066_v16 = vld [vmem:[#allocation7 + $0x1f8] sm:$0xff]  }
 0x531   :  { %v1265_v18 = vpop.f32.mrf.mxu1  ;;  %2848 = vmatprep.subr.bf16.mxu1 %v3063_v10  ;;  %2870 = vmatprep.subr.bf16.mxu0 %v3066_v16 }
 0x532   :  { %v1328_v1 = vpack.c.bf16 %v1313_v14, %v1312_v63  ;;  %v1266_v28 = vadd.f32 %v2384_v3, %v1265_v18  ;;  %v1318_v33 = vmax.f32 %v1274_v30, 0.0  ;;  %2849 = vmatpush3.bf16.msra.mxu1 %v3063_v10  ;;  %v3064_v63 = vld [vmem:[#allocation7 + $0x188] sm:$0xff]   ;;  %v3065_v14 = vld [vmem:[#allocation7 + $0x180] sm:$0xff]   ;;  %v3067_v18 = vld [vmem:[#allocation7 + $0x1f0] sm:$0xff]  }
 0x533   :  { %v2797_v26 = vpop.f32.mrf.mxu1  ;;  %2850 = vmatprep.subr.bf16.mxu1 %v3064_v63 }
 0x534   :  { %v1277_v11 = vadd.f32 %v2797_v26, %v2384_v3  ;;  %2822 = vmatprep.mubr.bf16.mxu0 %v1328_v1  ;;  %v1316_v15 = vmax.f32 %v1266_v28, 0.0  ;;  %v3069_v1 = vld [vmem:[#allocation7 + $0x1e0] sm:$0xff]  }
 0x535   :  { %v1268_v12 = vpop.f32.mrf.mxu1  ;;  %2823 = vmatmul.mubr.bf16.vlgmr.msra.gmra.mxu0 %v1329_v21  ;;  %v3070_v21 = vld [vmem:[#allocation7 + $0x1d8] sm:$0xff]   ;;  %v3430_v28 = vld [vmem:[#allocation8 + $0x5] ss:$0 sm:$0xff] }
 0x536   :  { %v1269_v31 = vadd.f32 %v2384_v3, %v1268_v12  ;;  %v1319_v17 = vmax.f32 %v1277_v11, 0.0  ;;  %2851 = vmatpush3.bf16.msra.mxu1 %v3064_v63  ;;  %2871 = vmatpush3.bf16.msra.mxu0 %v3066_v16 }
 0x537   :  { %v2800_v13 = vpop.f32.mrf.mxu1  ;;  %2852 = vmatprep.subr.bf16.mxu1 %v3065_v14  ;;  %2872 = vmatprep.subr.bf16.mxu0 %v3067_v18 }
 0x538   :  { %v1317_v36 = vmax.f32 %v1269_v31, 0.0  ;;  %v1331_v39 = vpack.c.bf16 %v1319_v17, %v1318_v33  ;;  %v1290_v37 = vadd.f32 %v2800_v13, %v2384_v3 }
 0x539   :  { %v1281_v38 = vpop.f32.mrf.mxu1 }
 0x53a   :  { %v1330_v34 = vpack.c.bf16 %v1317_v36, %v1316_v15  ;;  %v1282_v35 = vadd.f32 %v2384_v3, %v1281_v38  ;;  %v1322_v48 = vmax.f32 %v1290_v37, 0.0  ;;  %2853 = vmatpush3.bf16.msra.mxu1 %v3065_v14  ;;  %2873 = vmatpush3.bf16.msra.mxu0 %v3067_v18 }
 0x53b   :  { %v2801_v40 = vpop.f32.mrf.mxu1 }
 0x53c   :  { %v1293_v42 = vadd.f32 %v2801_v40, %v2384_v3  ;;  %2826 = vmatprep.mubr.bf16.mxu0 %v1330_v34  ;;  %v1320_v47 = vmax.f32 %v1282_v35, 0.0 }
 0x53d   :  { %v1284_v45 = vpop.f32.mrf.mxu1  ;;  %2827 = vmatmul.mubr.bf16.gmra.mxu0 %v1331_v39 }
 0x53e   :  { %v1285_v50 = vadd.f32 %v2384_v3, %v1284_v45  ;;  %v1323_v32 = vmax.f32 %v1293_v42, 0.0 }
 0x53f   :  { %v2804_v53 = vpop.f32.mrf.mxu1 }
 0x540   :  { %v1321_v54 = vmax.f32 %v1285_v50, 0.0  ;;  %v1333_v49 = vpack.c.bf16 %v1323_v32, %v1322_v48  ;;  %v1306_v60 = vadd.f32 %v2804_v53, %v2384_v3 }
 0x541   :  { %v1297_v55 = vpop.f32.mrf.mxu1 }
 0x542   :  { %v1332_v56 = vpack.c.bf16 %v1321_v54, %v1320_v47  ;;  %v1298_v58 = vadd.f32 %v2384_v3, %v1297_v55  ;;  %v1326_v9 = vmax.f32 %v1306_v60, 0.0 }
 0x543   :  { %v2805_v41 = vpop.f32.mrf.mxu1 }
 0x544   :  { %v1309_v59 = vadd.f32 %v2805_v41, %v2384_v3  ;;  %2830 = vmatprep.mubr.bf16.mxu0 %v1332_v56  ;;  %v1324_v8 = vmax.f32 %v1298_v58, 0.0 }
 0x545   :  { %v1300_v51 = vpop.f32.mrf.mxu1  ;;  %2831 = vmatmul.mubr.bf16.gmra.mxu0 %v1333_v49 }
 0x546   :  { %v1301_v5 = vadd.f32 %v2384_v3, %v1300_v51  ;;  %v1327_v7 = vmax.f32 %v1309_v59, 0.0  ;;  %v3068_v3 = vld [vmem:[#allocation7 + $0x1e8] sm:$0xff]  }
 0x547   :  { %2874 = vmatprep.subr.bf16.mxu0 %v3068_v3 }
 0x548   :  { %v1325_v61 = vmax.f32 %v1301_v5, 0.0  ;;  %v1335_v57 = vpack.c.bf16 %v1327_v7, %v1326_v9  ;;  %2875 = vmatpush3.bf16.msra.mxu0 %v3068_v3 }
 0x549   :  { %2876 = vmatprep.subr.bf16.mxu0 %v3069_v1 }
 0x54a   :  { %v1334_v62 = vpack.c.bf16 %v1325_v61, %v1324_v8 }
 0x54c   :  { %2834 = vmatprep.mubr.bf16.mxu0 %v1334_v62  ;;  %2877 = vmatpush3.bf16.msra.mxu0 %v3069_v1 }
 0x54d   :  { %2835 = vmatmul.mubr.bf16.gmra.mxu0 %v1335_v57  ;;  %2878 = vmatprep.subr.bf16.mxu0 %v3070_v21 }
 0x550   :  { %2879 = vmatpush3.bf16.msra.mxu0 %v3070_v21 }
 0x5f5   :  { %v2824_v26 = vpop.f32.mrf.mxu0 }
 0x5f6   :  { %v1452_v12 = vadd.f32 %v2824_v26, %v3430_v28 }
 0x5f7   :  { %v1443_v11 = vpop.f32.mrf.mxu0 }
 0x5f8   :  { %v1444_v30 = vadd.f32 %v3430_v28, %v1443_v11  ;;  %v3443_v38 = vadd.f32 %v1452_v12, %v3361_v27 }
 0x5f9   :  { %v2825_v31 = vpop.f32.mrf.mxu0 }
 0x5fa   :  { %v1455_v17 = vadd.f32 %v2825_v31, %v3430_v28  ;;  %v3436_v15 = vadd.f32 %v1444_v30, %v3354_v24 }
 0x5fb   :  { %v1446_v13 = vpop.f32.mrf.mxu0 }
 0x5fc   :  { %v3439_v36 = vadd.f32 %v1455_v17, %v3357_v25  ;;  %v1447_v33 = vadd.f32 %v3430_v28, %v1446_v13  ;;  %v1522_v42 = vmax.f32 %v3436_v15, 0.0  ;;  %v1524_v25 = vmax.f32 %v3443_v38, 0.0 }
 0x5fd   :  { %v2828_v34 = vpop.f32.mrf.mxu0 }
 0x5fe   :  { %v3446_v39 = vadd.f32 %v1447_v33, %v3364_v29  ;;  %v1525_v40 = vmax.f32 %v3439_v36, 0.0  ;;  %v1468_v45 = vadd.f32 %v2828_v34, %v3430_v28 }
 0x5ff   :  { %v1459_v35 = vpop.f32.mrf.mxu0 }
 0x600   :  { %v1523_v24 = vmax.f32 %v3446_v39, 0.0  ;;  %v1460_v37 = vadd.f32 %v3430_v28, %v1459_v35  ;;  %v1539_v53 = vpack.c.bf16 %v1525_v40, %v1524_v25  ;;  %v3463_v55 = vadd.f32 %v1468_v45, %v3381_v46  ;;  %v3077_v25 = vld [vmem:[#allocation7 + $0x220] sm:$0xff]   ;;  %v3078_v45 = vld [vmem:[#allocation7 + $0x218] sm:$0xff]  }
 0x601   :  { %v2829_v50 = vpop.f32.mrf.mxu0 }
 0x602   :  { %v1471_v27 = vadd.f32 %v2829_v50, %v3430_v28  ;;  %v1538_v32 = vpack.c.bf16 %v1523_v24, %v1522_v42  ;;  %v3456_v47 = vadd.f32 %v1460_v37, %v3374_v43  ;;  %v1528_v60 = vmax.f32 %v3463_v55, 0.0  ;;  %v3074_v42 = vld [vmem:[#allocation7 + $0x238] sm:$0xff]   ;;  %v3075_v24 = vld [vmem:[#allocation7 + $0x230] sm:$0xff]   ;;  %v3076_v37 = vld [vmem:[#allocation7 + $0x228] sm:$0xff]  }
 0x603   :  { %v1462_v29 = vpop.f32.mrf.mxu0  ;;  %2902 = vmatprep.subr.bf16.mxu1 %v3074_v42 }
 0x604   :  { %v3459_v54 = vadd.f32 %v1471_v27, %v3377_v44  ;;  %v1463_v48 = vadd.f32 %v3430_v28, %v1462_v29  ;;  %2854 = vmatprep.mubr.bf16.mxu1 %v1538_v32  ;;  %v1526_v43 = vmax.f32 %v3456_v47, 0.0  ;;  %v2402_v32 = vld [vmem:[#allocation8 + $0x6] ss:$0 sm:$0xff] }
 0x605   :  { %v2832_v56 = vpop.f32.mrf.mxu0  ;;  %2855 = vmatmul.mubr.bf16.vlgmr.msra.gmra.mxu1 %v1539_v53 }
 0x606   :  { %v3466_v49 = vadd.f32 %v1463_v48, %v3384_v52  ;;  %v1529_v41 = vmax.f32 %v3459_v54, 0.0  ;;  %v1484_v51 = vadd.f32 %v2832_v56, %v3430_v28  ;;  %2903 = vmatpush3.bf16.msra.mxu1 %v3074_v42 }
 0x607   :  { %v1475_v58 = vpop.f32.mrf.mxu0  ;;  %2904 = vmatprep.subr.bf16.mxu1 %v3075_v24 }
 0x608   :  { %v1527_v59 = vmax.f32 %v3466_v49, 0.0  ;;  %v1476_v44 = vadd.f32 %v3430_v28, %v1475_v58  ;;  %v1541_v52 = vpack.c.bf16 %v1529_v41, %v1528_v60  ;;  %v3483_v57 = vadd.f32 %v1484_v51, %v3401_v4 }
 0x609   :  { %v2833_v46 = vpop.f32.mrf.mxu0 }
 0x60a   :  { %v1487_v5 = vadd.f32 %v2833_v46, %v3430_v28  ;;  %v1540_v7 = vpack.c.bf16 %v1527_v59, %v1526_v43  ;;  %v3476_v61 = vadd.f32 %v1476_v44, %v3394_v0  ;;  %v1532_v3 = vmax.f32 %v3483_v57, 0.0  ;;  %2905 = vmatpush3.bf16.msra.mxu1 %v3075_v24 }
 0x60b   :  { %v1478_v8 = vpop.f32.mrf.mxu0  ;;  %2906 = vmatprep.subr.bf16.mxu1 %v3076_v37 }
 0x60c   :  { %v3479_v9 = vadd.f32 %v1487_v5, %v3397_v2  ;;  %v1479_v62 = vadd.f32 %v3430_v28, %v1478_v8  ;;  %2858 = vmatprep.mubr.bf16.mxu1 %v1540_v7  ;;  %v1530_v0 = vmax.f32 %v3476_v61, 0.0 }
 0x60d   :  { %v2836_v10 = vpop.f32.mrf.mxu0  ;;  %2859 = vmatmul.mubr.bf16.gmra.mxu1 %v1541_v52 }
 0x60e   :  { %v3486_v63 = vadd.f32 %v1479_v62, %v3404_v6  ;;  %v1533_v14 = vmax.f32 %v3479_v9, 0.0  ;;  %v1500_v1 = vadd.f32 %v2836_v10, %v3430_v28  ;;  %2907 = vmatpush3.bf16.msra.mxu1 %v3076_v37 }
 0x60f   :  { %v1491_v16 = vpop.f32.mrf.mxu0  ;;  %2908 = vmatprep.subr.bf16.mxu1 %v3077_v25 }
 0x610   :  { %v1531_v18 = vmax.f32 %v3486_v63, 0.0  ;;  %v1492_v2 = vadd.f32 %v3430_v28, %v1491_v16  ;;  %v1543_v6 = vpack.c.bf16 %v1533_v14, %v1532_v3  ;;  %v3503_v17 = vadd.f32 %v1500_v1, %v3421_v22  ;;  %v3072_v22 = vld [vmem:[#allocation7 + $0x1c8] sm:$0xff]  }
 0x611   :  { %v2837_v4 = vpop.f32.mrf.mxu0 }
 0x612   :  { %v1503_v21 = vadd.f32 %v2837_v4, %v3430_v28  ;;  %v1542_v26 = vpack.c.bf16 %v1531_v18, %v1530_v0  ;;  %v3496_v30 = vadd.f32 %v1492_v2, %v3414_v19  ;;  %v1536_v40 = vmax.f32 %v3503_v17, 0.0  ;;  %2909 = vmatpush3.bf16.msra.mxu1 %v3077_v25 }
 0x613   :  { %v1494_v11 = vpop.f32.mrf.mxu0  ;;  %2910 = vmatprep.subr.bf16.mxu1 %v3078_v45 }
 0x614   :  { %v3499_v12 = vadd.f32 %v1503_v21, %v3417_v20  ;;  %v1495_v31 = vadd.f32 %v3430_v28, %v1494_v11  ;;  %2862 = vmatprep.mubr.bf16.mxu1 %v1542_v26  ;;  %v1534_v34 = vmax.f32 %v3496_v30, 0.0  ;;  %v3071_v28 = vld [vmem:[#allocation7 + $0x1d0] sm:$0xff]  }
 0x615   :  { %2863 = vmatmul.mubr.bf16.gmra.mxu1 %v1543_v6  ;;  %2880 = vmatprep.subr.bf16.mxu0 %v3071_v28 }
 0x616   :  { %v3506_v13 = vadd.f32 %v1495_v31, %v3424_v23  ;;  %v1537_v33 = vmax.f32 %v3499_v12, 0.0  ;;  %2881 = vmatpush3.bf16.msra.mxu0 %v3071_v28  ;;  %v3073_v23 = vld [vmem:[#allocation7 + $0x1c0] sm:$0xff]   ;;  %2911 = vmatpush3.bf16.msra.mxu1 %v3078_v45 }
 0x617   :  { %2882 = vmatprep.subr.bf16.mxu0 %v3072_v22 }
 0x618   :  { %v1535_v19 = vmax.f32 %v3506_v13, 0.0  ;;  %v1545_v35 = vpack.c.bf16 %v1537_v33, %v1536_v40 }
 0x61a   :  { %v1544_v20 = vpack.c.bf16 %v1535_v19, %v1534_v34  ;;  %2883 = vmatpush3.bf16.msra.mxu0 %v3072_v22 }
 0x61b   :  { %2884 = vmatprep.subr.bf16.mxu0 %v3073_v23 }
 0x61c   :  { %2866 = vmatprep.mubr.bf16.mxu1 %v1544_v20 }
 0x61d   :  { %2867 = vmatmul.mubr.bf16.gmra.mxu1 %v1545_v35 }
 0x61e   :  { %2885 = vmatpush3.bf16.msra.mxu0 %v3073_v23 }
 0x6c5   :  { %v2856_v50 = vpop.f32.mrf.mxu1 }
 0x6c6   :  { %v1662_v56 = vadd.f32 %v2856_v50, %v2402_v32 }
 0x6c7   :  { %v1653_v27 = vpop.f32.mrf.mxu1 }
 0x6c8   :  { %v1654_v29 = vadd.f32 %v2402_v32, %v1653_v27  ;;  %v1718_v51 = vmax.f32 %v1662_v56, 0.0 }
 0x6c9   :  { %v2857_v53 = vpop.f32.mrf.mxu1 }
 0x6ca   :  { %v1665_v48 = vadd.f32 %v2857_v53, %v2402_v32  ;;  %v1716_v44 = vmax.f32 %v1654_v29, 0.0 }
 0x6cb   :  { %v1656_v41 = vpop.f32.mrf.mxu1 }
 0x6cc   :  { %v1657_v58 = vadd.f32 %v2402_v32, %v1656_v41  ;;  %v1719_v43 = vmax.f32 %v1665_v48, 0.0 }
 0x6cd   :  { %v2860_v59 = vpop.f32.mrf.mxu1 }
 0x6ce   :  { %v1717_v60 = vmax.f32 %v1657_v58, 0.0  ;;  %v1733_v7 = vpack.c.bf16 %v1719_v43, %v1718_v51  ;;  %v1678_v10 = vadd.f32 %v2860_v59, %v2402_v32  ;;  %v3079_v59 = vld [vmem:[#allocation7 + $0x210] sm:$0xff]   ;;  %v3082_v51 = vld [vmem:[#allocation10 + $0x38] sm:$0xff]  }
 0x6cf   :  { %v1669_v46 = vpop.f32.mrf.mxu1  ;;  %2912 = vmatprep.subr.bf16.mxu1 %v3079_v59  ;;  %2934 = vmatprep.subr.bf16.mxu0 %v3082_v51 }
 0x6d0   :  { %v1732_v5 = vpack.c.bf16 %v1717_v60, %v1716_v44  ;;  %v1670_v52 = vadd.f32 %v2402_v32, %v1669_v46  ;;  %v1722_v1 = vmax.f32 %v1678_v10, 0.0  ;;  %2913 = vmatpush3.bf16.msra.mxu1 %v3079_v59  ;;  %v3080_v44 = vld [vmem:[#allocation7 + $0x208] sm:$0xff]   ;;  %v3081_v60 = vld [vmem:[#allocation7 + $0x200] sm:$0xff]  }
 0x6d1   :  { %v2861_v8 = vpop.f32.mrf.mxu1  ;;  %2914 = vmatprep.subr.bf16.mxu1 %v3080_v44  ;;  %v3083_v46 = vld [vmem:[#allocation10 + $0x30] sm:$0xff]  }
 0x6d2   :  { %v1681_v62 = vadd.f32 %v2861_v8, %v2402_v32  ;;  %2886 = vmatprep.mubr.bf16.mxu0 %v1732_v5  ;;  %v1720_v2 = vmax.f32 %v1670_v52, 0.0  ;;  %v3085_v5 = vld [vmem:[#allocation10 + $0x20] sm:$0xff]  }
 0x6d3   :  { %v1672_v14 = vpop.f32.mrf.mxu1  ;;  %2887 = vmatmul.mubr.bf16.vlgmr.msra.gmra.mxu0 %v1733_v7  ;;  %v3512_v7 = vld [vmem:[#allocation10 + $0x18] sm:$0xff]  }
 0x6d4   :  { %v1673_v16 = vadd.f32 %v2402_v32, %v1672_v14  ;;  %v1723_v0 = vmax.f32 %v1681_v62, 0.0  ;;  %2915 = vmatpush3.bf16.msra.mxu1 %v3080_v44  ;;  %2935 = vmatpush3.bf16.msra.mxu0 %v3082_v51  ;;  %v2411_v62 = vld [vmem:[#allocation8 + $0x7] ss:$0 sm:$0xff] }
 0x6d5   :  { %v2864_v18 = vpop.f32.mrf.mxu1  ;;  %2916 = vmatprep.subr.bf16.mxu1 %v3081_v60  ;;  %2936 = vmatprep.subr.bf16.mxu0 %v3083_v46 }
 0x6d6   :  { %v1721_v3 = vmax.f32 %v1673_v16, 0.0  ;;  %v1735_v26 = vpack.c.bf16 %v1723_v0, %v1722_v1  ;;  %v1694_v33 = vadd.f32 %v2864_v18, %v2402_v32 }
 0x6d7   :  { %v1685_v4 = vpop.f32.mrf.mxu1 }
 0x6d8   :  { %v1734_v21 = vpack.c.bf16 %v1721_v3, %v1720_v2  ;;  %v1686_v6 = vadd.f32 %v2402_v32, %v1685_v4  ;;  %v1726_v22 = vmax.f32 %v1694_v33, 0.0  ;;  %2917 = vmatpush3.bf16.msra.mxu1 %v3081_v60  ;;  %2937 = vmatpush3.bf16.msra.mxu0 %v3083_v46 }
 0x6d9   :  { %v2865_v11 = vpop.f32.mrf.mxu1  ;;  %2966 = vmatprep.subr.bf16.mxu1 %v3082_v51 }
 0x6da   :  { %v1697_v31 = vadd.f32 %v2865_v11, %v2402_v32  ;;  %2890 = vmatprep.mubr.bf16.mxu0 %v1734_v21  ;;  %v1724_v35 = vmax.f32 %v1686_v6, 0.0 }
 0x6db   :  { %v1688_v34 = vpop.f32.mrf.mxu1  ;;  %2891 = vmatmul.mubr.bf16.gmra.mxu0 %v1735_v26 }
 0x6dc   :  { %v1689_v19 = vadd.f32 %v2402_v32, %v1688_v34  ;;  %v1727_v40 = vmax.f32 %v1697_v31, 0.0 }
 0x6dd   :  { %v2868_v20 = vpop.f32.mrf.mxu1 }
 0x6de   :  { %v1725_v28 = vmax.f32 %v1689_v19, 0.0  ;;  %v1737_v24 = vpack.c.bf16 %v1727_v40, %v1726_v22  ;;  %v1710_v50 = vadd.f32 %v2868_v20, %v2402_v32 }
 0x6df   :  { %v1701_v23 = vpop.f32.mrf.mxu1 }
 0x6e0   :  { %v1736_v42 = vpack.c.bf16 %v1725_v28, %v1724_v35  ;;  %v1702_v25 = vadd.f32 %v2402_v32, %v1701_v23  ;;  %v1730_v41 = vmax.f32 %v1710_v50, 0.0 }
 0x6e1   :  { %v2869_v37 = vpop.f32.mrf.mxu1 }
 0x6e2   :  { %v1713_v45 = vadd.f32 %v2869_v37, %v2402_v32  ;;  %2894 = vmatprep.mubr.bf16.mxu0 %v1736_v42  ;;  %v1728_v48 = vmax.f32 %v1702_v25, 0.0 }
 0x6e3   :  { %v1704_v27 = vpop.f32.mrf.mxu1  ;;  %2895 = vmatmul.mubr.bf16.gmra.mxu0 %v1737_v24 }
 0x6e4   :  { %v1705_v53 = vadd.f32 %v2402_v32, %v1704_v27  ;;  %v1731_v29 = vmax.f32 %v1713_v45, 0.0  ;;  %v3084_v32 = vld [vmem:[#allocation10 + $0x28] sm:$0xff]  }
 0x6e5   :  { %2938 = vmatprep.subr.bf16.mxu0 %v3084_v32 }
 0x6e6   :  { %v1729_v56 = vmax.f32 %v1705_v53, 0.0  ;;  %v1739_v43 = vpack.c.bf16 %v1731_v29, %v1730_v41  ;;  %2939 = vmatpush3.bf16.msra.mxu0 %v3084_v32 }
 0x6e7   :  { %2940 = vmatprep.subr.bf16.mxu0 %v3085_v5 }
 0x6e8   :  { %v1738_v58 = vpack.c.bf16 %v1729_v56, %v1728_v48 }
 0x6ea   :  { %2898 = vmatprep.mubr.bf16.mxu0 %v1738_v58  ;;  %2941 = vmatpush3.bf16.msra.mxu0 %v3085_v5 }
 0x6eb   :  { %2899 = vmatmul.mubr.bf16.gmra.mxu0 %v1739_v43  ;;  %2942 = vmatprep.subr.bf16.mxu0 %v3512_v7 }
 0x6ee   :  { %2943 = vmatpush3.bf16.msra.mxu0 %v3512_v7 }
 0x793   :  { %v2888_v8 = vpop.f32.mrf.mxu0 }
 0x794   :  { %v1856_v0 = vadd.f32 %v2888_v8, %v2411_v62 }
 0x795   :  { %v1847_v52 = vpop.f32.mrf.mxu0 }
 0x796   :  { %v1848_v14 = vadd.f32 %v2411_v62, %v1847_v52  ;;  %v1912_v26 = vmax.f32 %v1856_v0, 0.0 }
 0x797   :  { %v2889_v10 = vpop.f32.mrf.mxu0 }
 0x798   :  { %v1859_v16 = vadd.f32 %v2889_v10, %v2411_v62  ;;  %v1910_v4 = vmax.f32 %v1848_v14, 0.0 }
 0x799   :  { %v1850_v18 = vpop.f32.mrf.mxu0 }
 0x79a   :  { %v1851_v2 = vadd.f32 %v2411_v62, %v1850_v18  ;;  %v1913_v3 = vmax.f32 %v1859_v16, 0.0 }
 0x79b   :  { %v2892_v1 = vpop.f32.mrf.mxu0 }
 0x79c   :  { %v1911_v21 = vmax.f32 %v1851_v2, 0.0  ;;  %v1927_v31 = vpack.c.bf16 %v1913_v3, %v1912_v26  ;;  %v1872_v40 = vadd.f32 %v2892_v1, %v2411_v62 }
 0x79d   :  { %v1863_v11 = vpop.f32.mrf.mxu0 }
 0x79e   :  { %v1926_v6 = vpack.c.bf16 %v1911_v21, %v1910_v4  ;;  %v1864_v34 = vadd.f32 %v2411_v62, %v1863_v11  ;;  %v1916_v24 = vmax.f32 %v1872_v40, 0.0  ;;  %v3088_v21 = vld [vmem:[#allocation10 + $0x8] sm:$0xff]   ;;  %v2420_v11 = vld [vmem:[#allocation8 + $0x8] ss:$0 sm:$0xff] }
 0x79f   :  { %v2893_v33 = vpop.f32.mrf.mxu0 }
 0x7a0   :  { %v1875_v19 = vadd.f32 %v2893_v33, %v2411_v62  ;;  %2918 = vmatprep.mubr.bf16.mxu1 %v1926_v6  ;;  %v1914_v23 = vmax.f32 %v1864_v34, 0.0 }
 0x7a1   :  { %v1866_v20 = vpop.f32.mrf.mxu0  ;;  %2919 = vmatmul.mubr.bf16.vlgmr.msra.gmra.mxu1 %v1927_v31 }
 0x7a2   :  { %v1867_v35 = vadd.f32 %v2411_v62, %v1866_v20  ;;  %2974 = vmatpush3.bf16.msra.mxu1 %v3082_v51  ;;  %v1917_v28 = vmax.f32 %v1875_v19, 0.0 }
 0x7a3   :  { %v2896_v22 = vpop.f32.mrf.mxu0  ;;  %2967 = vmatprep.subr.bf16.mxu1 %v3083_v46 }
 0x7a4   :  { %v1915_v42 = vmax.f32 %v1867_v35, 0.0  ;;  %v1929_v45 = vpack.c.bf16 %v1917_v28, %v1916_v24  ;;  %v1888_v29 = vadd.f32 %v2896_v22, %v2411_v62 }
 0x7a5   :  { %v1879_v37 = vpop.f32.mrf.mxu0 }
 0x7a6   :  { %v1928_v25 = vpack.c.bf16 %v1915_v42, %v1914_v23  ;;  %2975 = vmatpush3.bf16.msra.mxu1 %v3083_v46  ;;  %v1880_v27 = vadd.f32 %v2411_v62, %v1879_v37  ;;  %v1920_v44 = vmax.f32 %v1888_v29, 0.0 }
 0x7a7   :  { %v2897_v50 = vpop.f32.mrf.mxu0  ;;  %2968 = vmatprep.subr.bf16.mxu1 %v3084_v32 }
 0x7a8   :  { %v1891_v53 = vadd.f32 %v2897_v50, %v2411_v62  ;;  %2922 = vmatprep.mubr.bf16.mxu1 %v1928_v25  ;;  %v1918_v43 = vmax.f32 %v1880_v27, 0.0 }
 0x7a9   :  { %v1882_v48 = vpop.f32.mrf.mxu0  ;;  %2923 = vmatmul.mubr.bf16.gmra.mxu1 %v1929_v45 }
 0x7aa   :  { %v1883_v56 = vadd.f32 %v2411_v62, %v1882_v48  ;;  %2976 = vmatpush3.bf16.msra.mxu1 %v3084_v32  ;;  %v1921_v41 = vmax.f32 %v1891_v53, 0.0 }
 0x7ab   :  { %v2900_v58 = vpop.f32.mrf.mxu0  ;;  %2969 = vmatprep.subr.bf16.mxu1 %v3085_v5 }
 0x7ac   :  { %v1919_v59 = vmax.f32 %v1883_v56, 0.0  ;;  %v1931_v46 = vpack.c.bf16 %v1921_v41, %v1920_v44  ;;  %v1904_v14 = vadd.f32 %v2900_v58, %v2411_v62 }
 0x7ad   :  { %v1895_v60 = vpop.f32.mrf.mxu0 }
 0x7ae   :  { %v1930_v51 = vpack.c.bf16 %v1919_v59, %v1918_v43  ;;  %2977 = vmatpush3.bf16.msra.mxu1 %v3085_v5  ;;  %v1896_v52 = vadd.f32 %v2411_v62, %v1895_v60  ;;  %v1924_v3 = vmax.f32 %v1904_v14, 0.0  ;;  %v3087_v5 = vld [vmem:[#allocation10 + $0x10] sm:$0xff]  }
 0x7af   :  { %v2901_v8 = vpop.f32.mrf.mxu0  ;;  %2970 = vmatprep.subr.bf16.mxu1 %v3512_v7  ;;  %2944 = vmatprep.subr.bf16.mxu0 %v3087_v5 }
 0x7b0   :  { %v1907_v10 = vadd.f32 %v2901_v8, %v2411_v62  ;;  %2926 = vmatprep.mubr.bf16.mxu1 %v1930_v51  ;;  %v1922_v18 = vmax.f32 %v1896_v52, 0.0  ;;  %2945 = vmatpush3.bf16.msra.mxu0 %v3087_v5 }
 0x7b1   :  { %v1898_v16 = vpop.f32.mrf.mxu0  ;;  %2927 = vmatmul.mubr.bf16.gmra.mxu1 %v1931_v46  ;;  %2946 = vmatprep.subr.bf16.mxu0 %v3088_v21 }
 0x7b2   :  { %v1899_v32 = vadd.f32 %v2411_v62, %v1898_v16  ;;  %2978 = vmatpush3.bf16.msra.mxu1 %v3512_v7  ;;  %v1925_v0 = vmax.f32 %v1907_v10, 0.0  ;;  %v3089_v62 = vld [vmem:[#allocation10] sm:$0xff]  }
 0x7b3   :  { %2971 = vmatprep.subr.bf16.mxu1 %v3087_v5 }
 0x7b4   :  { %v1923_v2 = vmax.f32 %v1899_v32, 0.0  ;;  %v1933_v4 = vpack.c.bf16 %v1925_v0, %v1924_v3  ;;  %2947 = vmatpush3.bf16.msra.mxu0 %v3088_v21 }
 0x7b5   :  { %2948 = vmatprep.subr.bf16.mxu0 %v3089_v62 }
 0x7b6   :  { %v1932_v1 = vpack.c.bf16 %v1923_v2, %v1922_v18  ;;  %2979 = vmatpush3.bf16.msra.mxu1 %v3087_v5  ;;  %v2429_v5 = vld [vmem:[%s3546_s6] ss:$0 sm:$0xff]  ;;  %s3227_s6 = smov [#allocation11]  }
 0x7b7   :  { %2972 = vmatprep.subr.bf16.mxu1 %v3088_v21  ;;  %s2317_s29 = sshll.u32 %s3227_s6, 4  ;;  %s2318_s29 = int_to_ptr.vmem [resolvable:$true] %s2317_s29 }
 0x7b8   :  { %2930 = vmatprep.mubr.bf16.mxu1 %v1932_v1  ;;  %2949 = vmatpush3.bf16.msra.mxu0 %v3089_v62  ;;  %s3190_s30 = scalar_lea.vmem %s2318_s29, 2048  ;;  %p3195_p12 = scmp.lt.s32.totalorder %s2318_s29, %s2318_s29 }
 0x7b9   :  { %2931 = vmatmul.mubr.bf16.gmra.mxu1 %v1933_v4  ;;  %p3191_p11 = scmp.ne.s32.totalorder %s2318_s29, %s3190_s30  ;;  %p3196_p13 = scmp.lt.s32.totalorder %s3190_s30, %s3190_s30 }
 0x7ba   :  { %2980 = vmatpush3.bf16.msra.mxu1 %v3088_v21 }
 0x7bb   :  { %2973 = vmatprep.subr.bf16.mxu1 %v3089_v62  ;;  %p3197_p0 = por %p3196_p13, %p3195_p12 }
 0x7bd   :  { %p3198_p1 = pnand %p3197_p0, %p3191_p11 }
 0x7be   :  { %2981 = vmatpush3.bf16.msra.mxu1 %v3089_v62 }
 0x861   :  { %v2920_v7 = vpop.f32.mrf.mxu1 }
 0x862   :  { %v2050_v34 = vadd.f32 %v2920_v7, %v2420_v11 }
 0x863   :  { %v2041_v26 = vpop.f32.mrf.mxu1 }
 0x864   :  { %v2042_v31 = vadd.f32 %v2420_v11, %v2041_v26  ;;  %v2106_v23 = vadd.f32 %v2050_v34, %v3443_v38 }
 0x865   :  { %v2921_v6 = vpop.f32.mrf.mxu1 }
 0x866   :  { %v2053_v33 = vadd.f32 %v2921_v6, %v2420_v11  ;;  %v2104_v28 = vadd.f32 %v2042_v31, %v3436_v15 }
 0x867   :  { %v2044_v19 = vpop.f32.mrf.mxu1 }
 0x868   :  { %v2045_v40 = vadd.f32 %v2420_v11, %v2044_v19  ;;  %v2107_v20 = vadd.f32 %v2053_v33, %v3439_v36 }
 0x869   :  { %v2924_v35 = vpop.f32.mrf.mxu1 }
 0x86a   :  { %v2105_v22 = vadd.f32 %v2045_v40, %v3446_v39  ;;  %v2121_v37 = vpack.c.bf16 %v2107_v20, %v2106_v23  ;;  %v2066_v27 = vadd.f32 %v2924_v35, %v2420_v11 }
 0x86b   :  { %v2057_v42 = vpop.f32.mrf.mxu1 }
 0x86c   :  { %v2120_v24 = vpack.c.bf16 %v2105_v22, %v2104_v28  ;;  %v2058_v45 = vadd.f32 %v2420_v11, %v2057_v42  ;;  %v2110_v38 = vadd.f32 %v2066_v27, %v3463_v55 }
 0x86d   :  { %v2925_v25 = vpop.f32.mrf.mxu1 }
 0x86e   :  { %v2069_v50 = vadd.f32 %v2925_v25, %v2420_v11  ;;  %2950 = vmatprep.mubr.bf16.mxu0 %v2120_v24  ;;  %v2108_v15 = vadd.f32 %v2058_v45, %v3456_v47 }
 0x86f   :  { %v2060_v53 = vpop.f32.mrf.mxu1  ;;  %2951 = vmatmul.mubr.bf16.vlgmr.msra.gmra.mxu0 %v2121_v37 }
 0x870   :  { %v2061_v29 = vadd.f32 %v2420_v11, %v2060_v53  ;;  %v2111_v36 = vadd.f32 %v2069_v50, %v3459_v54 }
 0x871   :  { %v2928_v48 = vpop.f32.mrf.mxu1 }
 0x872   :  { %v2109_v39 = vadd.f32 %v2061_v29, %v3466_v49  ;;  %v2123_v43 = vpack.c.bf16 %v2111_v36, %v2110_v38  ;;  %v2082_v60 = vadd.f32 %v2928_v48, %v2420_v11 }
 0x873   :  { %v2073_v56 = vpop.f32.mrf.mxu1 }
 0x874   :  { %v2122_v41 = vpack.c.bf16 %v2109_v39, %v2108_v15  ;;  %v2074_v59 = vadd.f32 %v2420_v11, %v2073_v56  ;;  %v2114_v55 = vadd.f32 %v2082_v60, %v3483_v57 }
 0x875   :  { %v2929_v58 = vpop.f32.mrf.mxu1 }
 0x876   :  { %v2085_v44 = vadd.f32 %v2929_v58, %v2420_v11  ;;  %2954 = vmatprep.mubr.bf16.mxu0 %v2122_v41  ;;  %v2112_v47 = vadd.f32 %v2074_v59, %v3476_v61 }
 0x877   :  { %v2076_v51 = vpop.f32.mrf.mxu1  ;;  %2955 = vmatmul.mubr.bf16.gmra.mxu0 %v2123_v43 }
 0x878   :  { %v2077_v46 = vadd.f32 %v2420_v11, %v2076_v51  ;;  %v2115_v54 = vadd.f32 %v2085_v44, %v3479_v9 }
 0x879   :  { %v2932_v8 = vpop.f32.mrf.mxu1 }
 0x87a   :  { %v2113_v49 = vadd.f32 %v2077_v46, %v3486_v63  ;;  %v2125_v14 = vpack.c.bf16 %v2115_v54, %v2114_v55  ;;  %v2098_v18 = vadd.f32 %v2932_v8, %v2420_v11 }
 0x87b   :  { %v2089_v52 = vpop.f32.mrf.mxu1 }
 0x87c   :  { %v2124_v10 = vpack.c.bf16 %v2113_v49, %v2112_v47  ;;  %v2090_v32 = vadd.f32 %v2420_v11, %v2089_v52  ;;  %v2118_v63 = vadd.f32 %v2098_v18, %v3503_v17 }
 0x87d   :  { %v2933_v16 = vpop.f32.mrf.mxu1 }
 0x87e   :  { %v2101_v0 = vadd.f32 %v2933_v16, %v2420_v11  ;;  %2958 = vmatprep.mubr.bf16.mxu1 %v2124_v10  ;;  %v2116_v1 = vadd.f32 %v2090_v32, %v3496_v30 }
 0x87f   :  { %v2092_v2 = vpop.f32.mrf.mxu1  ;;  %2959 = vmatmul.mubr.bf16.vlgmr.msra.gmra.mxu1 %v2125_v14 }
 0x880   :  { %v2093_v3 = vadd.f32 %v2420_v11, %v2092_v2  ;;  %v2119_v9 = vadd.f32 %v2101_v0, %v3499_v12 }
 0x882   :  { %v2117_v61 = vadd.f32 %v2093_v3, %v3506_v13  ;;  %v2127_v4 = vpack.c.bf16 %v2119_v9, %v2118_v63 }
 0x884   :  { %v2126_v57 = vpack.c.bf16 %v2117_v61, %v2116_v1 }
 0x886   :  { %2962 = vmatprep.mubr.bf16.mxu1 %v2126_v57 }
 0x887   :  { %2963 = vmatmul.mubr.bf16.gmra.mxu1 %v2127_v4 }
 0x92f   :  { %v2952_v21 = vpop.f32.mrf.mxu0 }
 0x930   :  { %v2242_v62 = vadd.f32 %v2952_v21, %v2429_v5 }
 0x931   :  { %v2233_v7 = vpop.f32.mrf.mxu0 }
 0x932   :  { %2298 = vst [vmem:[#allocation11 + $0x10] sm:$0xff] %v2242_v62  ;;  %v2234_v26 = vadd.f32 %v2429_v5, %v2233_v7 }
 0x933   :  { %v2953_v12 = vpop.f32.mrf.mxu0 }
 0x934   :  { %2296 = vst [vmem:[#allocation11] sm:$0xff] %v2234_v26  ;;  %v2245_v30 = vadd.f32 %v2953_v12, %v2429_v5 }
 0x935   :  { %v2236_v11 = vpop.f32.mrf.mxu0 }
 0x936   :  { %2299 = vst [vmem:[#allocation11 + $0x18] sm:$0xff] %v2245_v30  ;;  %v2237_v13 = vadd.f32 %v2429_v5, %v2236_v11 }
 0x937   :  { %v2956_v17 = vpop.f32.mrf.mxu0 }
 0x938   :  { %2297 = vst [vmem:[#allocation11 + $0x8] sm:$0xff] %v2237_v13  ;;  %v2258_v6 = vadd.f32 %v2956_v17, %v2429_v5 }
 0x939   :  { %v2249_v31 = vpop.f32.mrf.mxu0 }
 0x93a   :  { %2302 = vst [vmem:[#allocation11 + $0x30] sm:$0xff] %v2258_v6  ;;  %v2250_v33 = vadd.f32 %v2429_v5, %v2249_v31 }
 0x93b   :  { %v2957_v34 = vpop.f32.mrf.mxu0 }
 0x93c   :  { %2300 = vst [vmem:[#allocation11 + $0x20] sm:$0xff] %v2250_v33  ;;  %v2261_v19 = vadd.f32 %v2957_v34, %v2429_v5 }
 0x93d   :  { %v2252_v40 = vpop.f32.mrf.mxu0 }
 0x93e   :  { %2303 = vst [vmem:[#allocation11 + $0x38] sm:$0xff] %v2261_v19  ;;  %v2253_v20 = vadd.f32 %v2429_v5, %v2252_v40 }
 0x93f   :  { %v2960_v35 = vpop.f32.mrf.mxu1 }
 0x940   :  { %2301 = vst [vmem:[#allocation11 + $0x28] sm:$0xff] %v2253_v20  ;;  %v2274_v28 = vadd.f32 %v2960_v35, %v2429_v5 }
 0x941   :  { %v2265_v22 = vpop.f32.mrf.mxu1 }
 0x942   :  { %2306 = vst [vmem:[#allocation11 + $0x50] sm:$0xff] %v2274_v28  ;;  %v2266_v23 = vadd.f32 %v2429_v5, %v2265_v22 }
 0x943   :  { %v2961_v42 = vpop.f32.mrf.mxu1 }
 0x944   :  { %2304 = vst [vmem:[#allocation11 + $0x40] sm:$0xff] %v2266_v23  ;;  %v2277_v24 = vadd.f32 %v2961_v42, %v2429_v5 }
 0x945   :  { %v2268_v37 = vpop.f32.mrf.mxu1 }
 0x946   :  { %2307 = vst [vmem:[#allocation11 + $0x58] sm:$0xff] %v2277_v24  ;;  %v2269_v25 = vadd.f32 %v2429_v5, %v2268_v37 }
 0x947   :  { %v2964_v45 = vpop.f32.mrf.mxu1 }
 0x948   :  { %2305 = vst [vmem:[#allocation11 + $0x48] sm:$0xff] %v2269_v25  ;;  %v2290_v50 = vadd.f32 %v2964_v45, %v2429_v5 }
 0x949   :  { %v2281_v27 = vpop.f32.mrf.mxu1 }
 0x94a   :  { %2310 = vst [vmem:[#allocation11 + $0x70] sm:$0xff] %v2290_v50  ;;  %v2282_v53 = vadd.f32 %v2429_v5, %v2281_v27 }
 0x94b   :  { %v2965_v29 = vpop.f32.mrf.mxu1 }
 0x94c   :  { %2308 = vst [vmem:[#allocation11 + $0x60] sm:$0xff] %v2282_v53  ;;  %v2293_v36 = vadd.f32 %v2965_v29, %v2429_v5 }
 0x94d   :  { %v2284_v48 = vpop.f32.mrf.mxu1 }
 0x94e   :  { %2311 = vst [vmem:[#allocation11 + $0x78] sm:$0xff] %v2293_v36  ;;  %v2285_v15 = vadd.f32 %v2429_v5, %v2284_v48 }
 0x950   :  { %2309 = vst [vmem:[#allocation11 + $0x68] sm:$0xff] %v2285_v15 }
 0x951   :  { %3201 = shalt.err (!%p3198_p1)
}
 0x952   :  { %s3228_s8 = smov 128   ;;  %s3229_s9 = smov 8  }
 0x953   :  { %2323 = dma.vmem_to_hbm [thread:$0]  %s2318_s29, 2048, %s3547_s7, [#allocation4], %s3228_s8, %s3228_s8, %s3229_s9  }
 0x954   :  { %3216 = dma.done.wait [#allocation4], 2048  }
 0x955   :  { %3217 = vsyncadd [#allocation4], 4294965248 }
 0x956   :  { %2327 = vsyncpa [#allocation3], 1 }
 0x957   :  { %2328 = vsyncpa [#allocation6], 1 }
 0x958   :  { %2329 = vsyncpa [#allocation9], 1 }
 0x959   :  { %2330 = vsyncpa [#allocation4], 1 }

</bundles_post_ra>
